<compile_context>
chip_gen: v7x
topology: tpu7x:2x2x1
jax: 0.10.0
libtpu: 0.0.40
codegen_flags: <defaults>
</compile_context>

<pallas_src>
import functools

import jax
import jax.numpy as jnp
from jax.experimental import pallas as pl
from jax.experimental.pallas import tpu as pltpu


# ---------------------------------------------------------------------------
# helpers
# ---------------------------------------------------------------------------
def _vm():
    return pl.BlockSpec(memory_space=pltpu.MemorySpace.VMEM)


# ---------------------------------------------------------------------------
# Kernel 1: fused SAGEConv + ReLU stack
#   layer:  h <- relu( (A_norm @ h) @ W_l^T + b_l + h @ W_r^T )
#   A_norm is loaded once and reused for every layer; h never leaves VMEM between layers.
# ---------------------------------------------------------------------------
def sage_stack_kernel(a_ref, x_ref, wl0_ref, bl0_ref, wr0_ref,
                      wl_ref, bl_ref, wr_ref, o_ref):
    a = a_ref[...]                                           # (N, N)  bf16
    x = x_ref[...]                                           # (N, F)  bf16

    # layer 0 (input width F may differ from hidden width)
    aggr = jnp.dot(a, x, preferred_element_type=jnp.float32).astype(jnp.bfloat16)
    h = jnp.maximum(
        jnp.dot(aggr, wl0_ref[...], preferred_element_type=jnp.float32)
        + bl0_ref[...]
        + jnp.dot(x, wr0_ref[...], preferred_element_type=jnp.float32),
        0.0)

    # remaining layers: static unroll (num_layers is tiny), h stays resident
    for l in range(wl_ref.shape[0]):
        hb = h.astype(jnp.bfloat16)
        aggr = jnp.dot(a, hb, preferred_element_type=jnp.float32).astype(jnp.bfloat16)
        h = jnp.maximum(
            jnp.dot(aggr, wl_ref[l], preferred_element_type=jnp.float32)
            + bl_ref[l]
            + jnp.dot(hb, wr_ref[l], preferred_element_type=jnp.float32),
            0.0)

    o_ref[...] = h


def sage_stack(a_norm, x, layers):
    """layers: list of (wl_t (Fin,H), bl (H,), wr_t (Fin,H)); len(layers) >= 2 here."""
    bf = jnp.bfloat16
    wl0_t, bl0, wr0_t = layers[0]
    n = x.shape[0]
    h_dim = wl0_t.shape[1]
    rest = layers[1:]
    wl_s = jnp.stack([p[0] for p in rest]).astype(bf)        # (L-1, H, H)
    bl_s = jnp.stack([p[1] for p in rest])[:, None, :]       # (L-1, 1, H) f32
    wr_s = jnp.stack([p[2] for p in rest]).astype(bf)        # (L-1, H, H)
    return pl.pallas_call(
        sage_stack_kernel,
        out_shape=jax.ShapeDtypeStruct((n, h_dim), jnp.float32),
        in_specs=[_vm()] * 8,
        out_specs=_vm(),
    )(a_norm.astype(bf), x.astype(bf),
      wl0_t.astype(bf), bl0.reshape(1, -1), wr0_t.astype(bf),
      wl_s, bl_s, wr_s)


# ---------------------------------------------------------------------------
# Kernel 2: fused Conv1d + ReLU + Linear + ReLU + Dropout(eval) + Linear + log_softmax
#   x_ref : (k, B, C) bf16   sorted top-k node features, tap axis leading
#   cw_ref: (K, C, O) bf16   Conv1d weight, tap-major      (torch (O, C, K) transposed)
#   w1_ref: (L, O, H1) bf16  lin1 W^T re-permuted so the torch channel-major flat index
#                            (o*L + l) maps to [l, o, :]  -> no in-kernel reshape needed
# ---------------------------------------------------------------------------
def conv_head_kernel(x_ref, cw_ref, cb_ref, w1_ref, b1_ref, w2_ref, b2_ref, o_ref):
    k, B, _ = x_ref.shape
    K, _, O = cw_ref.shape
    L = k - K + 1
    H1 = w1_ref.shape[2]
    cb = cb_ref[...]                                         # (1, O)

    acc1 = jnp.zeros((B, H1), jnp.float32)
    for l in range(L):                                       # static unroll (L is small)
        acc = jnp.zeros((B, O), jnp.float32)
        for t in range(K):
            acc = acc + jnp.dot(x_ref[l + t], cw_ref[t],
                                preferred_element_type=jnp.float32)
        z = jnp.maximum(acc + cb, 0.0).astype(jnp.bfloat16)  # Conv1d+ReLU output column l, (B, O)
        acc1 = acc1 + jnp.dot(z, w1_ref[l], preferred_element_type=jnp.float32)

    h1 = jnp.maximum(acc1 + b1_ref[...], 0.0)
    # TODO(synk): training-mode Dropout(p) would draw a mask via pltpu.prng_*; eval mode is identity.
    logits = jnp.dot(h1.astype(jnp.bfloat16), w2_ref[...],
                     preferred_element_type=jnp.float32) + b2_ref[...]

    m = jnp.max(logits, axis=-1, keepdims=True)
    lse = jnp.log(jnp.sum(jnp.exp(logits - m), axis=-1, keepdims=True)) + m
    o_ref[...] = logits - lse


def conv_head(x_kbh, conv_w_ock, conv_b, w1_t, b1, w2_t, b2):
    k, B, _ = x_kbh.shape
    O, C, K = conv_w_ock.shape
    L = k - K + 1
    H1 = w1_t.shape[1]
    n_cls = w2_t.shape[1]
    bf = jnp.bfloat16
    cw = jnp.transpose(conv_w_ock, (2, 1, 0)).astype(bf)                  # (K, C, O)
    w1p = jnp.transpose(w1_t.reshape(O, L, H1), (1, 0, 2)).astype(bf)     # (L, O, H1)
    return pl.pallas_call(
        conv_head_kernel,
        out_shape=jax.ShapeDtypeStruct((B, n_cls), jnp.float32),
        in_specs=[_vm()] * 7,
        out_specs=_vm(),
    )(x_kbh.astype(bf), cw, conv_b.reshape(1, O),
      w1p, b1.reshape(1, H1), w2_t.astype(bf), b2.reshape(1, n_cls))


# ---------------------------------------------------------------------------
# Full DGCNN forward
# ---------------------------------------------------------------------------
@functools.partial(jax.jit, static_argnames=("num_graphs", "nodes_per_graph", "k"))
def dgcnn_forward(x, a_norm, params, *, num_graphs, nodes_per_graph, k):
    # GNN stack: one fused Pallas call for all SAGEConv+ReLU layers
    h = sage_stack(a_norm, x, params["sage"])                             # (N, H) f32

    # SortAggregation(k): per-graph descending sort by last feature channel, take top-k.
    # (data-dependent selection stays in plain JAX glue; top_k instead of full argsort)
    H = h.shape[1]
    hg = h.reshape(num_graphs, nodes_per_graph, H)
    _, idx = jax.lax.top_k(hg[:, :, -1], k)                               # (B, k) descending
    idx_b = jnp.broadcast_to(idx[:, :, None], (num_graphs, k, H))
    topk = jnp.take_along_axis(hg, idx_b, axis=1)                         # (B, k, H)

    # tap axis leading -> the fused conv/head kernel slices whole (B, C) tiles per tap
    x_kbh = jnp.transpose(topk, (1, 0, 2))                                # (k, B, H)

    # Conv1d + ReLU + lin1 + ReLU + dropout(eval) + lin2 + log_softmax: one fused Pallas call
    return conv_head(x_kbh, params["conv1d_w"], params["conv1d_b"],
                     params["lin1_wt"], params["lin1_b"],
                     params["lin2_wt"], params["lin2_b"])


# ---------------------------------------------------------------------------
# main
# ---------------------------------------------------------------------------
if __name__ == "__main__":
    # small configuration consistent with the module
    num_features = 8
    num_neurons = 32
    num_layers = 3          # conv1 + 2 extra SAGEConvs; Conv1d kernel_size = num_layers
    k = 8                   # SortAggregation k
    conv_out = 32
    n_classes = 4
    num_graphs = 2
    nodes_per_graph = 16
    N = num_graphs * nodes_per_graph
    L = k - num_layers + 1  # Conv1d output length

    key = jax.random.PRNGKey(0)
    keys = jax.random.split(key, 16)

    # node features
    x = jax.random.normal(keys[0], (N, num_features), dtype=jnp.float32)

    # deterministic ring graph per component (both directions)
    base = jnp.arange(nodes_per_graph)
    src_l = jnp.concatenate([base, (base + 1) % nodes_per_graph])
    dst_l = jnp.concatenate([(base + 1) % nodes_per_graph, base])
    src = jnp.concatenate([src_l + g * nodes_per_graph for g in range(num_graphs)])
    dst = jnp.concatenate([dst_l + g * nodes_per_graph for g in range(num_graphs)])

    # dense row-normalized adjacency: A_norm[i, j] = 1/deg_in(i) for edge j -> i (PyG mean aggr)
    A = jnp.zeros((N, N), jnp.float32).at[dst, src].add(1.0)
    deg = A.sum(axis=1, keepdims=True)
    a_norm = A / jnp.maximum(deg, 1.0)

    def init_w(kk, shape, scale=0.1):
        return jax.random.normal(kk, shape, dtype=jnp.float32) * scale

    # SAGEConv params: out = lin_l(mean_aggr) + lin_r(x); lin_l has bias, lin_r does not.
    sage_params = []
    fin = num_features
    ki = 1
    for _ in range(num_layers):
        wl_t = init_w(keys[ki], (fin, num_neurons)); ki += 1              # W_l^T
        bl = init_w(keys[ki], (num_neurons,));       ki += 1
        wr_t = init_w(keys[ki], (fin, num_neurons)); ki += 1              # W_r^T
        sage_params.append((wl_t, bl, wr_t))
        fin = num_neurons

    params = {
        "sage": sage_params,
        "conv1d_w": init_w(keys[ki], (conv_out, num_neurons, num_layers)),  # (O, C, K) like torch
        "conv1d_b": init_w(keys[ki + 1], (conv_out,)),
        "lin1_wt": init_w(keys[ki + 2], (conv_out * L, num_neurons)),       # W1^T
        "lin1_b": init_w(keys[ki + 3], (num_neurons,)),
        "lin2_wt": init_w(keys[ki + 4], (num_neurons, n_classes)),          # W2^T
        "lin2_b": init_w(keys[ki + 5], (n_classes,)),
    }

    out = dgcnn_forward(x, a_norm, params,
                        num_graphs=num_graphs,
                        nodes_per_graph=nodes_per_graph,
                        k=k)
    out = jax.block_until_ready(out)

    # pure-JAX f32 reference of the same forward pass (bf16 MXU operands -> loose tolerance)
    def reference(x, a_norm, params):
        h = x
        for wl_t, bl, wr_t in params["sage"]:
            h = jnp.maximum((a_norm @ h) @ wl_t + bl + h @ wr_t, 0.0)
        hg = h.reshape(num_graphs, nodes_per_graph, -1)
        _, idx = jax.lax.top_k(hg[:, :, -1], k)
        topk = jnp.take_along_axis(
            hg, jnp.broadcast_to(idx[:, :, None], (num_graphs, k, hg.shape[-1])), axis=1)
        xn = jnp.transpose(topk, (0, 2, 1))                               # (B, C, k)
        w = params["conv1d_w"]
        O, _, K = w.shape
        Lr = k - K + 1
        conv = sum(jnp.einsum("bcl,oc->bol", xn[:, :, t:t + Lr], w[:, :, t]) for t in range(K))
        conv = conv + params["conv1d_b"][None, :, None]
        flat = jnp.maximum(conv, 0.0).reshape(num_graphs, -1)
        h1 = jnp.maximum(flat @ params["lin1_wt"] + params["lin1_b"], 0.0)
        logits = h1 @ params["lin2_wt"] + params["lin2_b"]
        return jax.nn.log_softmax(logits, axis=-1)

    ref = reference(x, a_norm, params)

    assert out.shape == (num_graphs, n_classes)
    # rows of log_softmax must exp-sum to 1
    assert jnp.allclose(jnp.sum(jnp.exp(out), axis=-1), 1.0, atol=1e-4)
    # match the f32 reference up to bf16 matmul error
    assert jnp.allclose(out, ref, atol=5e-2), (out, ref)
    print("KERNEL_OK")
</pallas_src>

<mosaic_0001>
module attributes {stable_mosaic.version = 11 : i64} {
  func.func @sage_stack_kernel(%arg0: memref<32x32xbf16, #tpu.memory_space<vmem>>, %arg1: memref<32x8xbf16, #tpu.memory_space<vmem>>, %arg2: memref<8x32xbf16, #tpu.memory_space<vmem>>, %arg3: memref<1x32xf32, #tpu.memory_space<vmem>>, %arg4: memref<8x32xbf16, #tpu.memory_space<vmem>>, %arg5: memref<2x32x32xbf16, #tpu.memory_space<vmem>>, %arg6: memref<2x1x32xf32, #tpu.memory_space<vmem>>, %arg7: memref<2x32x32xbf16, #tpu.memory_space<vmem>>, %arg8: memref<32x32xf32, #tpu.memory_space<vmem>>) attributes {dimension_semantics = [], scalar_prefetch = 0 : i64, scratch_operands = 0 : i64, tpu.core_type = #tpu.core_type<tc>} {
    %c0 = arith.constant 0 : index
    %c0_0 = arith.constant 0 : index
    %0 = vector.load %arg0[%c0, %c0_0] : memref<32x32xbf16, #tpu.memory_space<vmem>>, vector<32x32xbf16>
    %c0_1 = arith.constant 0 : index
    %c0_2 = arith.constant 0 : index
    %1 = vector.load %arg1[%c0_1, %c0_2] : memref<32x8xbf16, #tpu.memory_space<vmem>>, vector<32x8xbf16>
    %cst = arith.constant dense<0.000000e+00> : vector<32x8xf32>
    %2 = tpu.matmul %0, %1, %cst {dimension_numbers = #tpu.dot_dimension_numbers<[1], [0], [0], [1], [0, 0, 1, 1], [], []>} : vector<32x32xbf16>, vector<32x8xbf16>, vector<32x8xf32> -> vector<32x8xf32>
    %3 = arith.truncf %2 : vector<32x8xf32> to vector<32x8xbf16>
    %c0_3 = arith.constant 0 : index
    %c0_4 = arith.constant 0 : index
    %4 = vector.load %arg2[%c0_3, %c0_4] : memref<8x32xbf16, #tpu.memory_space<vmem>>, vector<8x32xbf16>
    %cst_5 = arith.constant dense<0.000000e+00> : vector<32x32xf32>
    %5 = tpu.matmul %3, %4, %cst_5 {dimension_numbers = #tpu.dot_dimension_numbers<[1], [0], [0], [1], [0, 0, 1, 1], [], []>} : vector<32x8xbf16>, vector<8x32xbf16>, vector<32x32xf32> -> vector<32x32xf32>
    %c0_6 = arith.constant 0 : index
    %c0_7 = arith.constant 0 : index
    %6 = vector.load %arg3[%c0_6, %c0_7] : memref<1x32xf32, #tpu.memory_space<vmem>>, vector<1x32xf32>
    %7 = vector.broadcast %6 : vector<1x32xf32> to vector<32x32xf32>
    %8 = arith.addf %5, %7 : vector<32x32xf32>
    %c0_8 = arith.constant 0 : index
    %c0_9 = arith.constant 0 : index
    %9 = vector.load %arg4[%c0_8, %c0_9] : memref<8x32xbf16, #tpu.memory_space<vmem>>, vector<8x32xbf16>
    %cst_10 = arith.constant dense<0.000000e+00> : vector<32x32xf32>
    %10 = tpu.matmul %1, %9, %cst_10 {dimension_numbers = #tpu.dot_dimension_numbers<[1], [0], [0], [1], [0, 0, 1, 1], [], []>} : vector<32x8xbf16>, vector<8x32xbf16>, vector<32x32xf32> -> vector<32x32xf32>
    %11 = arith.addf %8, %10 : vector<32x32xf32>
    %cst_11 = arith.constant 0.000000e+00 : f32
    %12 = vector.broadcast %cst_11 : f32 to vector<32x32xf32>
    %13 = arith.maximumf %11, %12 : vector<32x32xf32>
    %14 = arith.truncf %13 : vector<32x32xf32> to vector<32x32xbf16>
    %cst_12 = arith.constant dense<0.000000e+00> : vector<32x32xf32>
    %15 = tpu.matmul %0, %14, %cst_12 {dimension_numbers = #tpu.dot_dimension_numbers<[1], [0], [0], [1], [0, 0, 1, 1], [], []>} : vector<32x32xbf16>, vector<32x32xbf16>, vector<32x32xf32> -> vector<32x32xf32>
    %16 = arith.truncf %15 : vector<32x32xf32> to vector<32x32xbf16>
    %c0_13 = arith.constant 0 : index
    %c0_14 = arith.constant 0 : index
    %c0_15 = arith.constant 0 : index
    %17 = vector.load %arg5[%c0_13, %c0_14, %c0_15] : memref<2x32x32xbf16, #tpu.memory_space<vmem>>, vector<1x32x32xbf16>
    %18 = vector.shape_cast %17 : vector<1x32x32xbf16> to vector<32x32xbf16>
    %cst_16 = arith.constant dense<0.000000e+00> : vector<32x32xf32>
    %19 = tpu.matmul %16, %18, %cst_16 {dimension_numbers = #tpu.dot_dimension_numbers<[1], [0], [0], [1], [0, 0, 1, 1], [], []>} : vector<32x32xbf16>, vector<32x32xbf16>, vector<32x32xf32> -> vector<32x32xf32>
    %c0_17 = arith.constant 0 : index
    %c0_18 = arith.constant 0 : index
    %c0_19 = arith.constant 0 : index
    %20 = vector.load %arg6[%c0_17, %c0_18, %c0_19] : memref<2x1x32xf32, #tpu.memory_space<vmem>>, vector<1x1x32xf32>
    %21 = vector.shape_cast %20 : vector<1x1x32xf32> to vector<1x32xf32>
    %22 = vector.broadcast %21 : vector<1x32xf32> to vector<32x32xf32>
    %23 = arith.addf %19, %22 : vector<32x32xf32>
    %c0_20 = arith.constant 0 : index
    %c0_21 = arith.constant 0 : index
    %c0_22 = arith.constant 0 : index
    %24 = vector.load %arg7[%c0_20, %c0_21, %c0_22] : memref<2x32x32xbf16, #tpu.memory_space<vmem>>, vector<1x32x32xbf16>
    %25 = vector.shape_cast %24 : vector<1x32x32xbf16> to vector<32x32xbf16>
    %cst_23 = arith.constant dense<0.000000e+00> : vector<32x32xf32>
    %26 = tpu.matmul %14, %25, %cst_23 {dimension_numbers = #tpu.dot_dimension_numbers<[1], [0], [0], [1], [0, 0, 1, 1], [], []>} : vector<32x32xbf16>, vector<32x32xbf16>, vector<32x32xf32> -> vector<32x32xf32>
    %27 = arith.addf %23, %26 : vector<32x32xf32>
    %cst_24 = arith.constant 0.000000e+00 : f32
    %28 = vector.broadcast %cst_24 : f32 to vector<32x32xf32>
    %29 = arith.maximumf %27, %28 : vector<32x32xf32>
    %30 = arith.truncf %29 : vector<32x32xf32> to vector<32x32xbf16>
    %cst_25 = arith.constant dense<0.000000e+00> : vector<32x32xf32>
    %31 = tpu.matmul %0, %30, %cst_25 {dimension_numbers = #tpu.dot_dimension_numbers<[1], [0], [0], [1], [0, 0, 1, 1], [], []>} : vector<32x32xbf16>, vector<32x32xbf16>, vector<32x32xf32> -> vector<32x32xf32>
    %32 = arith.truncf %31 : vector<32x32xf32> to vector<32x32xbf16>
    %c1 = arith.constant 1 : index
    %c0_26 = arith.constant 0 : index
    %c0_27 = arith.constant 0 : index
    %33 = vector.load %arg5[%c1, %c0_26, %c0_27] : memref<2x32x32xbf16, #tpu.memory_space<vmem>>, vector<1x32x32xbf16>
    %34 = vector.shape_cast %33 : vector<1x32x32xbf16> to vector<32x32xbf16>
    %cst_28 = arith.constant dense<0.000000e+00> : vector<32x32xf32>
    %35 = tpu.matmul %32, %34, %cst_28 {dimension_numbers = #tpu.dot_dimension_numbers<[1], [0], [0], [1], [0, 0, 1, 1], [], []>} : vector<32x32xbf16>, vector<32x32xbf16>, vector<32x32xf32> -> vector<32x32xf32>
    %c1_29 = arith.constant 1 : index
    %c0_30 = arith.constant 0 : index
    %c0_31 = arith.constant 0 : index
    %36 = vector.load %arg6[%c1_29, %c0_30, %c0_31] : memref<2x1x32xf32, #tpu.memory_space<vmem>>, vector<1x1x32xf32>
    %37 = vector.shape_cast %36 : vector<1x1x32xf32> to vector<1x32xf32>
    %38 = vector.broadcast %37 : vector<1x32xf32> to vector<32x32xf32>
    %39 = arith.addf %35, %38 : vector<32x32xf32>
    %c1_32 = arith.constant 1 : index
    %c0_33 = arith.constant 0 : index
    %c0_34 = arith.constant 0 : index
    %40 = vector.load %arg7[%c1_32, %c0_33, %c0_34] : memref<2x32x32xbf16, #tpu.memory_space<vmem>>, vector<1x32x32xbf16>
    %41 = vector.shape_cast %40 : vector<1x32x32xbf16> to vector<32x32xbf16>
    %cst_35 = arith.constant dense<0.000000e+00> : vector<32x32xf32>
    %42 = tpu.matmul %30, %41, %cst_35 {dimension_numbers = #tpu.dot_dimension_numbers<[1], [0], [0], [1], [0, 0, 1, 1], [], []>} : vector<32x32xbf16>, vector<32x32xbf16>, vector<32x32xf32> -> vector<32x32xf32>
    %43 = arith.addf %39, %42 : vector<32x32xf32>
    %cst_36 = arith.constant 0.000000e+00 : f32
    %44 = vector.broadcast %cst_36 : f32 to vector<32x32xf32>
    %45 = arith.maximumf %43, %44 : vector<32x32xf32>
    %c0_37 = arith.constant 0 : index
    %c0_38 = arith.constant 0 : index
    %46 = vector.load %arg8[%c0_37, %c0_38] : memref<32x32xf32, #tpu.memory_space<vmem>>, vector<32x32xf32>
    tpu.vector_store %arg8[%c0_37, %c0_38], %45 {strides = array<i32>} : memref<32x32xf32, #tpu.memory_space<vmem>>, vector<32x32xf32>,
    return
  }
}

module attributes {stable_mosaic.version = 11 : i64} {
  func.func @conv_head_kernel(%arg0: memref<8x2x32xbf16, #tpu.memory_space<vmem>>, %arg1: memref<3x32x32xbf16, #tpu.memory_space<vmem>>, %arg2: memref<1x32xf32, #tpu.memory_space<vmem>>, %arg3: memref<6x32x32xbf16, #tpu.memory_space<vmem>>, %arg4: memref<1x32xf32, #tpu.memory_space<vmem>>, %arg5: memref<32x4xbf16, #tpu.memory_space<vmem>>, %arg6: memref<1x4xf32, #tpu.memory_space<vmem>>, %arg7: memref<2x4xf32, #tpu.memory_space<vmem>>) attributes {dimension_semantics = [], scalar_prefetch = 0 : i64, scratch_operands = 0 : i64, tpu.core_type = #tpu.core_type<tc>} {
    %c0 = arith.constant 0 : index
    %c0_0 = arith.constant 0 : index
    %0 = vector.load %arg2[%c0, %c0_0] : memref<1x32xf32, #tpu.memory_space<vmem>>, vector<1x32xf32>
    %cst = arith.constant 0.000000e+00 : f32
    %1 = vector.broadcast %cst : f32 to vector<2x32xf32>
    %cst_1 = arith.constant 0.000000e+00 : f32
    %2 = vector.broadcast %cst_1 : f32 to vector<2x32xf32>
    %c0_2 = arith.constant 0 : index
    %c0_3 = arith.constant 0 : index
    %c0_4 = arith.constant 0 : index
    %3 = vector.load %arg0[%c0_2, %c0_3, %c0_4] : memref<8x2x32xbf16, #tpu.memory_space<vmem>>, vector<1x2x32xbf16>
    %4 = vector.shape_cast %3 : vector<1x2x32xbf16> to vector<2x32xbf16>
    %c0_5 = arith.constant 0 : index
    %c0_6 = arith.constant 0 : index
    %c0_7 = arith.constant 0 : index
    %5 = vector.load %arg1[%c0_5, %c0_6, %c0_7] : memref<3x32x32xbf16, #tpu.memory_space<vmem>>, vector<1x32x32xbf16>
    %6 = vector.shape_cast %5 : vector<1x32x32xbf16> to vector<32x32xbf16>
    %cst_8 = arith.constant dense<0.000000e+00> : vector<2x32xf32>
    %7 = tpu.matmul %4, %6, %cst_8 {dimension_numbers = #tpu.dot_dimension_numbers<[1], [0], [0], [1], [0, 0, 1, 1], [], []>} : vector<2x32xbf16>, vector<32x32xbf16>, vector<2x32xf32> -> vector<2x32xf32>
    %8 = arith.addf %2, %7 : vector<2x32xf32>
    %c1 = arith.constant 1 : index
    %c0_9 = arith.constant 0 : index
    %c0_10 = arith.constant 0 : index
    %9 = vector.load %arg0[%c1, %c0_9, %c0_10] : memref<8x2x32xbf16, #tpu.memory_space<vmem>>, vector<1x2x32xbf16>
    %10 = vector.shape_cast %9 : vector<1x2x32xbf16> to vector<2x32xbf16>
    %c1_11 = arith.constant 1 : index
    %c0_12 = arith.constant 0 : index
    %c0_13 = arith.constant 0 : index
    %11 = vector.load %arg1[%c1_11, %c0_12, %c0_13] : memref<3x32x32xbf16, #tpu.memory_space<vmem>>, vector<1x32x32xbf16>
    %12 = vector.shape_cast %11 : vector<1x32x32xbf16> to vector<32x32xbf16>
    %cst_14 = arith.constant dense<0.000000e+00> : vector<2x32xf32>
    %13 = tpu.matmul %10, %12, %cst_14 {dimension_numbers = #tpu.dot_dimension_numbers<[1], [0], [0], [1], [0, 0, 1, 1], [], []>} : vector<2x32xbf16>, vector<32x32xbf16>, vector<2x32xf32> -> vector<2x32xf32>
    %14 = arith.addf %8, %13 : vector<2x32xf32>
    %c2 = arith.constant 2 : index
    %c0_15 = arith.constant 0 : index
    %c0_16 = arith.constant 0 : index
    %15 = vector.load %arg0[%c2, %c0_15, %c0_16] : memref<8x2x32xbf16, #tpu.memory_space<vmem>>, vector<1x2x32xbf16>
    %16 = vector.shape_cast %15 : vector<1x2x32xbf16> to vector<2x32xbf16>
    %c2_17 = arith.constant 2 : index
    %c0_18 = arith.constant 0 : index
    %c0_19 = arith.constant 0 : index
    %17 = vector.load %arg1[%c2_17, %c0_18, %c0_19] : memref<3x32x32xbf16, #tpu.memory_space<vmem>>, vector<1x32x32xbf16>
    %18 = vector.shape_cast %17 : vector<1x32x32xbf16> to vector<32x32xbf16>
    %cst_20 = arith.constant dense<0.000000e+00> : vector<2x32xf32>
    %19 = tpu.matmul %16, %18, %cst_20 {dimension_numbers = #tpu.dot_dimension_numbers<[1], [0], [0], [1], [0, 0, 1, 1], [], []>} : vector<2x32xbf16>, vector<32x32xbf16>, vector<2x32xf32> -> vector<2x32xf32>
    %20 = arith.addf %14, %19 : vector<2x32xf32>
    %21 = vector.broadcast %0 : vector<1x32xf32> to vector<2x32xf32>
    %22 = arith.addf %20, %21 : vector<2x32xf32>
    %cst_21 = arith.constant 0.000000e+00 : f32
    %23 = vector.broadcast %cst_21 : f32 to vector<2x32xf32>
    %24 = arith.maximumf %22, %23 : vector<2x32xf32>
    %25 = arith.truncf %24 : vector<2x32xf32> to vector<2x32xbf16>
    %c0_22 = arith.constant 0 : index
    %c0_23 = arith.constant 0 : index
    %c0_24 = arith.constant 0 : index
    %26 = vector.load %arg3[%c0_22, %c0_23, %c0_24] : memref<6x32x32xbf16, #tpu.memory_space<vmem>>, vector<1x32x32xbf16>
    %27 = vector.shape_cast %26 : vector<1x32x32xbf16> to vector<32x32xbf16>
    %cst_25 = arith.constant dense<0.000000e+00> : vector<2x32xf32>
    %28 = tpu.matmul %25, %27, %cst_25 {dimension_numbers = #tpu.dot_dimension_numbers<[1], [0], [0], [1], [0, 0, 1, 1], [], []>} : vector<2x32xbf16>, vector<32x32xbf16>, vector<2x32xf32> -> vector<2x32xf32>
    %29 = arith.addf %1, %28 : vector<2x32xf32>
    %cst_26 = arith.constant 0.000000e+00 : f32
    %30 = vector.broadcast %cst_26 : f32 to vector<2x32xf32>
    %c1_27 = arith.constant 1 : index
    %c0_28 = arith.constant 0 : index
    %c0_29 = arith.constant 0 : index
    %31 = vector.load %arg0[%c1_27, %c0_28, %c0_29] : memref<8x2x32xbf16, #tpu.memory_space<vmem>>, vector<1x2x32xbf16>
    %32 = vector.shape_cast %31 : vector<1x2x32xbf16> to vector<2x32xbf16>
    %c0_30 = arith.constant 0 : index
    %c0_31 = arith.constant 0 : index
    %c0_32 = arith.constant 0 : index
    %33 = vector.load %arg1[%c0_30, %c0_31, %c0_32] : memref<3x32x32xbf16, #tpu.memory_space<vmem>>, vector<1x32x32xbf16>
    %34 = vector.shape_cast %33 : vector<1x32x32xbf16> to vector<32x32xbf16>
    %cst_33 = arith.constant dense<0.000000e+00> : vector<2x32xf32>
    %35 = tpu.matmul %32, %34, %cst_33 {dimension_numbers = #tpu.dot_dimension_numbers<[1], [0], [0], [1], [0, 0, 1, 1], [], []>} : vector<2x32xbf16>, vector<32x32xbf16>, vector<2x32xf32> -> vector<2x32xf32>
    %36 = arith.addf %30, %35 : vector<2x32xf32>
    %c2_34 = arith.constant 2 : index
    %c0_35 = arith.constant 0 : index
    %c0_36 = arith.constant 0 : index
    %37 = vector.load %arg0[%c2_34, %c0_35, %c0_36] : memref<8x2x32xbf16, #tpu.memory_space<vmem>>, vector<1x2x32xbf16>
    %38 = vector.shape_cast %37 : vector<1x2x32xbf16> to vector<2x32xbf16>
    %c1_37 = arith.constant 1 : index
    %c0_38 = arith.constant 0 : index
    %c0_39 = arith.constant 0 : index
    %39 = vector.load %arg1[%c1_37, %c0_38, %c0_39] : memref<3x32x32xbf16, #tpu.memory_space<vmem>>, vector<1x32x32xbf16>
    %40 = vector.shape_cast %39 : vector<1x32x32xbf16> to vector<32x32xbf16>
    %cst_40 = arith.constant dense<0.000000e+00> : vector<2x32xf32>
    %41 = tpu.matmul %38, %40, %cst_40 {dimension_numbers = #tpu.dot_dimension_numbers<[1], [0], [0], [1], [0, 0, 1, 1], [], []>} : vector<2x32xbf16>, vector<32x32xbf16>, vector<2x32xf32> -> vector<2x32xf32>
    %42 = arith.addf %36, %41 : vector<2x32xf32>
    %c3 = arith.constant 3 : index
    %c0_41 = arith.constant 0 : index
    %c0_42 = arith.constant 0 : index
    %43 = vector.load %arg0[%c3, %c0_41, %c0_42] : memref<8x2x32xbf16, #tpu.memory_space<vmem>>, vector<1x2x32xbf16>
    %44 = vector.shape_cast %43 : vector<1x2x32xbf16> to vector<2x32xbf16>
    %c2_43 = arith.constant 2 : index
    %c0_44 = arith.constant 0 : index
    %c0_45 = arith.constant 0 : index
    %45 = vector.load %arg1[%c2_43, %c0_44, %c0_45] : memref<3x32x32xbf16, #tpu.memory_space<vmem>>, vector<1x32x32xbf16>
    %46 = vector.shape_cast %45 : vector<1x32x32xbf16> to vector<32x32xbf16>
    %cst_46 = arith.constant dense<0.000000e+00> : vector<2x32xf32>
    %47 = tpu.matmul %44, %46, %cst_46 {dimension_numbers = #tpu.dot_dimension_numbers<[1], [0], [0], [1], [0, 0, 1, 1], [], []>} : vector<2x32xbf16>, vector<32x32xbf16>, vector<2x32xf32> -> vector<2x32xf32>
    %48 = arith.addf %42, %47 : vector<2x32xf32>
    %49 = vector.broadcast %0 : vector<1x32xf32> to vector<2x32xf32>
    %50 = arith.addf %48, %49 : vector<2x32xf32>
    %cst_47 = arith.constant 0.000000e+00 : f32
    %51 = vector.broadcast %cst_47 : f32 to vector<2x32xf32>
    %52 = arith.maximumf %50, %51 : vector<2x32xf32>
    %53 = arith.truncf %52 : vector<2x32xf32> to vector<2x32xbf16>
    %c1_48 = arith.constant 1 : index
    %c0_49 = arith.constant 0 : index
    %c0_50 = arith.constant 0 : index
    %54 = vector.load %arg3[%c1_48, %c0_49, %c0_50] : memref<6x32x32xbf16, #tpu.memory_space<vmem>>, vector<1x32x32xbf16>
    %55 = vector.shape_cast %54 : vector<1x32x32xbf16> to vector<32x32xbf16>
    %cst_51 = arith.constant dense<0.000000e+00> : vector<2x32xf32>
    %56 = tpu.matmul %53, %55, %cst_51 {dimension_numbers = #tpu.dot_dimension_numbers<[1], [0], [0], [1], [0, 0, 1, 1], [], []>} : vector<2x32xbf16>, vector<32x32xbf16>, vector<2x32xf32> -> vector<2x32xf32>
    %57 = arith.addf %29, %56 : vector<2x32xf32>
    %cst_52 = arith.constant 0.000000e+00 : f32
    %58 = vector.broadcast %cst_52 : f32 to vector<2x32xf32>
    %c2_53 = arith.constant 2 : index
    %c0_54 = arith.constant 0 : index
    %c0_55 = arith.constant 0 : index
    %59 = vector.load %arg0[%c2_53, %c0_54, %c0_55] : memref<8x2x32xbf16, #tpu.memory_space<vmem>>, vector<1x2x32xbf16>
    %60 = vector.shape_cast %59 : vector<1x2x32xbf16> to vector<2x32xbf16>
    %c0_56 = arith.constant 0 : index
    %c0_57 = arith.constant 0 : index
    %c0_58 = arith.constant 0 : index
    %61 = vector.load %arg1[%c0_56, %c0_57, %c0_58] : memref<3x32x32xbf16, #tpu.memory_space<vmem>>, vector<1x32x32xbf16>
    %62 = vector.shape_cast %61 : vector<1x32x32xbf16> to vector<32x32xbf16>
    %cst_59 = arith.constant dense<0.000000e+00> : vector<2x32xf32>
    %63 = tpu.matmul %60, %62, %cst_59 {dimension_numbers = #tpu.dot_dimension_numbers<[1], [0], [0], [1], [0, 0, 1, 1], [], []>} : vector<2x32xbf16>, vector<32x32xbf16>, vector<2x32xf32> -> vector<2x32xf32>
    %64 = arith.addf %58, %63 : vector<2x32xf32>
    %c3_60 = arith.constant 3 : index
    %c0_61 = arith.constant 0 : index
    %c0_62 = arith.constant 0 : index
    %65 = vector.load %arg0[%c3_60, %c0_61, %c0_62] : memref<8x2x32xbf16, #tpu.memory_space<vmem>>, vector<1x2x32xbf16>
    %66 = vector.shape_cast %65 : vector<1x2x32xbf16> to vector<2x32xbf16>
    %c1_63 = arith.constant 1 : index
    %c0_64 = arith.constant 0 : index
    %c0_65 = arith.constant 0 : index
    %67 = vector.load %arg1[%c1_63, %c0_64, %c0_65] : memref<3x32x32xbf16, #tpu.memory_space<vmem>>, vector<1x32x32xbf16>
    %68 = vector.shape_cast %67 : vector<1x32x32xbf16> to vector<32x32xbf16>
    %cst_66 = arith.constant dense<0.000000e+00> : vector<2x32xf32>
    %69 = tpu.matmul %66, %68, %cst_66 {dimension_numbers = #tpu.dot_dimension_numbers<[1], [0], [0], [1], [0, 0, 1, 1], [], []>} : vector<2x32xbf16>, vector<32x32xbf16>, vector<2x32xf32> -> vector<2x32xf32>
    %70 = arith.addf %64, %69 : vector<2x32xf32>
    %c4 = arith.constant 4 : index
    %c0_67 = arith.constant 0 : index
    %c0_68 = arith.constant 0 : index
    %71 = vector.load %arg0[%c4, %c0_67, %c0_68] : memref<8x2x32xbf16, #tpu.memory_space<vmem>>, vector<1x2x32xbf16>
    %72 = vector.shape_cast %71 : vector<1x2x32xbf16> to vector<2x32xbf16>
    %c2_69 = arith.constant 2 : index
    %c0_70 = arith.constant 0 : index
    %c0_71 = arith.constant 0 : index
    %73 = vector.load %arg1[%c2_69, %c0_70, %c0_71] : memref<3x32x32xbf16, #tpu.memory_space<vmem>>, vector<1x32x32xbf16>
    %74 = vector.shape_cast %73 : vector<1x32x32xbf16> to vector<32x32xbf16>
    %cst_72 = arith.constant dense<0.000000e+00> : vector<2x32xf32>
    %75 = tpu.matmul %72, %74, %cst_72 {dimension_numbers = #tpu.dot_dimension_numbers<[1], [0], [0], [1], [0, 0, 1, 1], [], []>} : vector<2x32xbf16>, vector<32x32xbf16>, vector<2x32xf32> -> vector<2x32xf32>
    %76 = arith.addf %70, %75 : vector<2x32xf32>
    %77 = vector.broadcast %0 : vector<1x32xf32> to vector<2x32xf32>
    %78 = arith.addf %76, %77 : vector<2x32xf32>
    %cst_73 = arith.constant 0.000000e+00 : f32
    %79 = vector.broadcast %cst_73 : f32 to vector<2x32xf32>
    %80 = arith.maximumf %78, %79 : vector<2x32xf32>
    %81 = arith.truncf %80 : vector<2x32xf32> to vector<2x32xbf16>
    %c2_74 = arith.constant 2 : index
    %c0_75 = arith.constant 0 : index
    %c0_76 = arith.constant 0 : index
    %82 = vector.load %arg3[%c2_74, %c0_75, %c0_76] : memref<6x32x32xbf16, #tpu.memory_space<vmem>>, vector<1x32x32xbf16>
    %83 = vector.shape_cast %82 : vector<1x32x32xbf16> to vector<32x32xbf16>
    %cst_77 = arith.constant dense<0.000000e+00> : vector<2x32xf32>
    %84 = tpu.matmul %81, %83, %cst_77 {dimension_numbers = #tpu.dot_dimension_numbers<[1], [0], [0], [1], [0, 0, 1, 1], [], []>} : vector<2x32xbf16>, vector<32x32xbf16>, vector<2x32xf32> -> vector<2x32xf32>
    %85 = arith.addf %57, %84 : vector<2x32xf32>
    %cst_78 = arith.constant 0.000000e+00 : f32
    %86 = vector.broadcast %cst_78 : f32 to vector<2x32xf32>
    %c3_79 = arith.constant 3 : index
    %c0_80 = arith.constant 0 : index
    %c0_81 = arith.constant 0 : index
    %87 = vector.load %arg0[%c3_79, %c0_80, %c0_81] : memref<8x2x32xbf16, #tpu.memory_space<vmem>>, vector<1x2x32xbf16>
    %88 = vector.shape_cast %87 : vector<1x2x32xbf16> to vector<2x32xbf16>
    %c0_82 = arith.constant 0 : index
    %c0_83 = arith.constant 0 : index
    %c0_84 = arith.constant 0 : index
    %89 = vector.load %arg1[%c0_82, %c0_83, %c0_84] : memref<3x32x32xbf16, #tpu.memory_space<vmem>>, vector<1x32x32xbf16>
    %90 = vector.shape_cast %89 : vector<1x32x32xbf16> to vector<32x32xbf16>
    %cst_85 = arith.constant dense<0.000000e+00> : vector<2x32xf32>
    %91 = tpu.matmul %88, %90, %cst_85 {dimension_numbers = #tpu.dot_dimension_numbers<[1], [0], [0], [1], [0, 0, 1, 1], [], []>} : vector<2x32xbf16>, vector<32x32xbf16>, vector<2x32xf32> -> vector<2x32xf32>
    %92 = arith.addf %86, %91 : vector<2x32xf32>
    %c4_86 = arith.constant 4 : index
    %c0_87 = arith.constant 0 : index
    %c0_88 = arith.constant 0 : index
    %93 = vector.load %arg0[%c4_86, %c0_87, %c0_88] : memref<8x2x32xbf16, #tpu.memory_space<vmem>>, vector<1x2x32xbf16>
    %94 = vector.shape_cast %93 : vector<1x2x32xbf16> to vector<2x32xbf16>
    %c1_89 = arith.constant 1 : index
    %c0_90 = arith.constant 0 : index
    %c0_91 = arith.constant 0 : index
    %95 = vector.load %arg1[%c1_89, %c0_90, %c0_91] : memref<3x32x32xbf16, #tpu.memory_space<vmem>>, vector<1x32x32xbf16>
    %96 = vector.shape_cast %95 : vector<1x32x32xbf16> to vector<32x32xbf16>
    %cst_92 = arith.constant dense<0.000000e+00> : vector<2x32xf32>
    %97 = tpu.matmul %94, %96, %cst_92 {dimension_numbers = #tpu.dot_dimension_numbers<[1], [0], [0], [1], [0, 0, 1, 1], [], []>} : vector<2x32xbf16>, vector<32x32xbf16>, vector<2x32xf32> -> vector<2x32xf32>
    %98 = arith.addf %92, %97 : vector<2x32xf32>
    %c5 = arith.constant 5 : index
    %c0_93 = arith.constant 0 : index
    %c0_94 = arith.constant 0 : index
    %99 = vector.load %arg0[%c5, %c0_93, %c0_94] : memref<8x2x32xbf16, #tpu.memory_space<vmem>>, vector<1x2x32xbf16>
    %100 = vector.shape_cast %99 : vector<1x2x32xbf16> to vector<2x32xbf16>
    %c2_95 = arith.constant 2 : index
    %c0_96 = arith.constant 0 : index
    %c0_97 = arith.constant 0 : index
    %101 = vector.load %arg1[%c2_95, %c0_96, %c0_97] : memref<3x32x32xbf16, #tpu.memory_space<vmem>>, vector<1x32x32xbf16>
    %102 = vector.shape_cast %101 : vector<1x32x32xbf16> to vector<32x32xbf16>
    %cst_98 = arith.constant dense<0.000000e+00> : vector<2x32xf32>
    %103 = tpu.matmul %100, %102, %cst_98 {dimension_numbers = #tpu.dot_dimension_numbers<[1], [0], [0], [1], [0, 0, 1, 1], [], []>} : vector<2x32xbf16>, vector<32x32xbf16>, vector<2x32xf32> -> vector<2x32xf32>
    %104 = arith.addf %98, %103 : vector<2x32xf32>
    %105 = vector.broadcast %0 : vector<1x32xf32> to vector<2x32xf32>
    %106 = arith.addf %104, %105 : vector<2x32xf32>
    %cst_99 = arith.constant 0.000000e+00 : f32
    %107 = vector.broadcast %cst_99 : f32 to vector<2x32xf32>
    %108 = arith.maximumf %106, %107 : vector<2x32xf32>
    %109 = arith.truncf %108 : vector<2x32xf32> to vector<2x32xbf16>
    %c3_100 = arith.constant 3 : index
    %c0_101 = arith.constant 0 : index
    %c0_102 = arith.constant 0 : index
    %110 = vector.load %arg3[%c3_100, %c0_101, %c0_102] : memref<6x32x32xbf16, #tpu.memory_space<vmem>>, vector<1x32x32xbf16>
    %111 = vector.shape_cast %110 : vector<1x32x32xbf16> to vector<32x32xbf16>
    %cst_103 = arith.constant dense<0.000000e+00> : vector<2x32xf32>
    %112 = tpu.matmul %109, %111, %cst_103 {dimension_numbers = #tpu.dot_dimension_numbers<[1], [0], [0], [1], [0, 0, 1, 1], [], []>} : vector<2x32xbf16>, vector<32x32xbf16>, vector<2x32xf32> -> vector<2x32xf32>
    %113 = arith.addf %85, %112 : vector<2x32xf32>
    %cst_104 = arith.constant 0.000000e+00 : f32
    %114 = vector.broadcast %cst_104 : f32 to vector<2x32xf32>
    %c4_105 = arith.constant 4 : index
    %c0_106 = arith.constant 0 : index
    %c0_107 = arith.constant 0 : index
    %115 = vector.load %arg0[%c4_105, %c0_106, %c0_107] : memref<8x2x32xbf16, #tpu.memory_space<vmem>>, vector<1x2x32xbf16>
    %116 = vector.shape_cast %115 : vector<1x2x32xbf16> to vector<2x32xbf16>
    %c0_108 = arith.constant 0 : index
    %c0_109 = arith.constant 0 : index
    %c0_110 = arith.constant 0 : index
    %117 = vector.load %arg1[%c0_108, %c0_109, %c0_110] : memref<3x32x32xbf16, #tpu.memory_space<vmem>>, vector<1x32x32xbf16>
    %118 = vector.shape_cast %117 : vector<1x32x32xbf16> to vector<32x32xbf16>
    %cst_111 = arith.constant dense<0.000000e+00> : vector<2x32xf32>
    %119 = tpu.matmul %116, %118, %cst_111 {dimension_numbers = #tpu.dot_dimension_numbers<[1], [0], [0], [1], [0, 0, 1, 1], [], []>} : vector<2x32xbf16>, vector<32x32xbf16>, vector<2x32xf32> -> vector<2x32xf32>
    %120 = arith.addf %114, %119 : vector<2x32xf32>
    %c5_112 = arith.constant 5 : index
    %c0_113 = arith.constant 0 : index
    %c0_114 = arith.constant 0 : index
    %121 = vector.load %arg0[%c5_112, %c0_113, %c0_114] : memref<8x2x32xbf16, #tpu.memory_space<vmem>>, vector<1x2x32xbf16>
    %122 = vector.shape_cast %121 : vector<1x2x32xbf16> to vector<2x32xbf16>
    %c1_115 = arith.constant 1 : index
    %c0_116 = arith.constant 0 : index
    %c0_117 = arith.constant 0 : index
    %123 = vector.load %arg1[%c1_115, %c0_116, %c0_117] : memref<3x32x32xbf16, #tpu.memory_space<vmem>>, vector<1x32x32xbf16>
    %124 = vector.shape_cast %123 : vector<1x32x32xbf16> to vector<32x32xbf16>
    %cst_118 = arith.constant dense<0.000000e+00> : vector<2x32xf32>
    %125 = tpu.matmul %122, %124, %cst_118 {dimension_numbers = #tpu.dot_dimension_numbers<[1], [0], [0], [1], [0, 0, 1, 1], [], []>} : vector<2x32xbf16>, vector<32x32xbf16>, vector<2x32xf32> -> vector<2x32xf32>
    %126 = arith.addf %120, %125 : vector<2x32xf32>
    %c6 = arith.constant 6 : index
    %c0_119 = arith.constant 0 : index
    %c0_120 = arith.constant 0 : index
    %127 = vector.load %arg0[%c6, %c0_119, %c0_120] : memref<8x2x32xbf16, #tpu.memory_space<vmem>>, vector<1x2x32xbf16>
    %128 = vector.shape_cast %127 : vector<1x2x32xbf16> to vector<2x32xbf16>
    %c2_121 = arith.constant 2 : index
    %c0_122 = arith.constant 0 : index
    %c0_123 = arith.constant 0 : index
    %129 = vector.load %arg1[%c2_121, %c0_122, %c0_123] : memref<3x32x32xbf16, #tpu.memory_space<vmem>>, vector<1x32x32xbf16>
    %130 = vector.shape_cast %129 : vector<1x32x32xbf16> to vector<32x32xbf16>
    %cst_124 = arith.constant dense<0.000000e+00> : vector<2x32xf32>
    %131 = tpu.matmul %128, %130, %cst_124 {dimension_numbers = #tpu.dot_dimension_numbers<[1], [0], [0], [1], [0, 0, 1, 1], [], []>} : vector<2x32xbf16>, vector<32x32xbf16>, vector<2x32xf32> -> vector<2x32xf32>
    %132 = arith.addf %126, %131 : vector<2x32xf32>
    %133 = vector.broadcast %0 : vector<1x32xf32> to vector<2x32xf32>
    %134 = arith.addf %132, %133 : vector<2x32xf32>
    %cst_125 = arith.constant 0.000000e+00 : f32
    %135 = vector.broadcast %cst_125 : f32 to vector<2x32xf32>
    %136 = arith.maximumf %134, %135 : vector<2x32xf32>
    %137 = arith.truncf %136 : vector<2x32xf32> to vector<2x32xbf16>
    %c4_126 = arith.constant 4 : index
    %c0_127 = arith.constant 0 : index
    %c0_128 = arith.constant 0 : index
    %138 = vector.load %arg3[%c4_126, %c0_127, %c0_128] : memref<6x32x32xbf16, #tpu.memory_space<vmem>>, vector<1x32x32xbf16>
    %139 = vector.shape_cast %138 : vector<1x32x32xbf16> to vector<32x32xbf16>
    %cst_129 = arith.constant dense<0.000000e+00> : vector<2x32xf32>
    %140 = tpu.matmul %137, %139, %cst_129 {dimension_numbers = #tpu.dot_dimension_numbers<[1], [0], [0], [1], [0, 0, 1, 1], [], []>} : vector<2x32xbf16>, vector<32x32xbf16>, vector<2x32xf32> -> vector<2x32xf32>
    %141 = arith.addf %113, %140 : vector<2x32xf32>
    %cst_130 = arith.constant 0.000000e+00 : f32
    %142 = vector.broadcast %cst_130 : f32 to vector<2x32xf32>
    %c5_131 = arith.constant 5 : index
    %c0_132 = arith.constant 0 : index
    %c0_133 = arith.constant 0 : index
    %143 = vector.load %arg0[%c5_131, %c0_132, %c0_133] : memref<8x2x32xbf16, #tpu.memory_space<vmem>>, vector<1x2x32xbf16>
    %144 = vector.shape_cast %143 : vector<1x2x32xbf16> to vector<2x32xbf16>
    %c0_134 = arith.constant 0 : index
    %c0_135 = arith.constant 0 : index
    %c0_136 = arith.constant 0 : index
    %145 = vector.load %arg1[%c0_134, %c0_135, %c0_136] : memref<3x32x32xbf16, #tpu.memory_space<vmem>>, vector<1x32x32xbf16>
    %146 = vector.shape_cast %145 : vector<1x32x32xbf16> to vector<32x32xbf16>
    %cst_137 = arith.constant dense<0.000000e+00> : vector<2x32xf32>
    %147 = tpu.matmul %144, %146, %cst_137 {dimension_numbers = #tpu.dot_dimension_numbers<[1], [0], [0], [1], [0, 0, 1, 1], [], []>} : vector<2x32xbf16>, vector<32x32xbf16>, vector<2x32xf32> -> vector<2x32xf32>
    %148 = arith.addf %142, %147 : vector<2x32xf32>
    %c6_138 = arith.constant 6 : index
    %c0_139 = arith.constant 0 : index
    %c0_140 = arith.constant 0 : index
    %149 = vector.load %arg0[%c6_138, %c0_139, %c0_140] : memref<8x2x32xbf16, #tpu.memory_space<vmem>>, vector<1x2x32xbf16>
    %150 = vector.shape_cast %149 : vector<1x2x32xbf16> to vector<2x32xbf16>
    %c1_141 = arith.constant 1 : index
    %c0_142 = arith.constant 0 : index
    %c0_143 = arith.constant 0 : index
    %151 = vector.load %arg1[%c1_141, %c0_142, %c0_143] : memref<3x32x32xbf16, #tpu.memory_space<vmem>>, vector<1x32x32xbf16>
    %152 = vector.shape_cast %151 : vector<1x32x32xbf16> to vector<32x32xbf16>
    %cst_144 = arith.constant dense<0.000000e+00> : vector<2x32xf32>
    %153 = tpu.matmul %150, %152, %cst_144 {dimension_numbers = #tpu.dot_dimension_numbers<[1], [0], [0], [1], [0, 0, 1, 1], [], []>} : vector<2x32xbf16>, vector<32x32xbf16>, vector<2x32xf32> -> vector<2x32xf32>
    %154 = arith.addf %148, %153 : vector<2x32xf32>
    %c7 = arith.constant 7 : index
    %c0_145 = arith.constant 0 : index
    %c0_146 = arith.constant 0 : index
    %155 = vector.load %arg0[%c7, %c0_145, %c0_146] : memref<8x2x32xbf16, #tpu.memory_space<vmem>>, vector<1x2x32xbf16>
    %156 = vector.shape_cast %155 : vector<1x2x32xbf16> to vector<2x32xbf16>
    %c2_147 = arith.constant 2 : index
    %c0_148 = arith.constant 0 : index
    %c0_149 = arith.constant 0 : index
    %157 = vector.load %arg1[%c2_147, %c0_148, %c0_149] : memref<3x32x32xbf16, #tpu.memory_space<vmem>>, vector<1x32x32xbf16>
    %158 = vector.shape_cast %157 : vector<1x32x32xbf16> to vector<32x32xbf16>
    %cst_150 = arith.constant dense<0.000000e+00> : vector<2x32xf32>
    %159 = tpu.matmul %156, %158, %cst_150 {dimension_numbers = #tpu.dot_dimension_numbers<[1], [0], [0], [1], [0, 0, 1, 1], [], []>} : vector<2x32xbf16>, vector<32x32xbf16>, vector<2x32xf32> -> vector<2x32xf32>
    %160 = arith.addf %154, %159 : vector<2x32xf32>
    %161 = vector.broadcast %0 : vector<1x32xf32> to vector<2x32xf32>
    %162 = arith.addf %160, %161 : vector<2x32xf32>
    %cst_151 = arith.constant 0.000000e+00 : f32
    %163 = vector.broadcast %cst_151 : f32 to vector<2x32xf32>
    %164 = arith.maximumf %162, %163 : vector<2x32xf32>
    %165 = arith.truncf %164 : vector<2x32xf32> to vector<2x32xbf16>
    %c5_152 = arith.constant 5 : index
    %c0_153 = arith.constant 0 : index
    %c0_154 = arith.constant 0 : index
    %166 = vector.load %arg3[%c5_152, %c0_153, %c0_154] : memref<6x32x32xbf16, #tpu.memory_space<vmem>>, vector<1x32x32xbf16>
    %167 = vector.shape_cast %166 : vector<1x32x32xbf16> to vector<32x32xbf16>
    %cst_155 = arith.constant dense<0.000000e+00> : vector<2x32xf32>
    %168 = tpu.matmul %165, %167, %cst_155 {dimension_numbers = #tpu.dot_dimension_numbers<[1], [0], [0], [1], [0, 0, 1, 1], [], []>} : vector<2x32xbf16>, vector<32x32xbf16>, vector<2x32xf32> -> vector<2x32xf32>
    %169 = arith.addf %141, %168 : vector<2x32xf32>
    %c0_156 = arith.constant 0 : index
    %c0_157 = arith.constant 0 : index
    %170 = vector.load %arg4[%c0_156, %c0_157] : memref<1x32xf32, #tpu.memory_space<vmem>>, vector<1x32xf32>
    %171 = vector.broadcast %170 : vector<1x32xf32> to vector<2x32xf32>
    %172 = arith.addf %169, %171 : vector<2x32xf32>
    %cst_158 = arith.constant 0.000000e+00 : f32
    %173 = vector.broadcast %cst_158 : f32 to vector<2x32xf32>
    %174 = arith.maximumf %172, %173 : vector<2x32xf32>
    %175 = arith.truncf %174 : vector<2x32xf32> to vector<2x32xbf16>
    %c0_159 = arith.constant 0 : index
    %c0_160 = arith.constant 0 : index
    %176 = vector.load %arg5[%c0_159, %c0_160] : memref<32x4xbf16, #tpu.memory_space<vmem>>, vector<32x4xbf16>
    %cst_161 = arith.constant dense<0.000000e+00> : vector<2x4xf32>
    %177 = tpu.matmul %175, %176, %cst_161 {dimension_numbers = #tpu.dot_dimension_numbers<[1], [0], [0], [1], [0, 0, 1, 1], [], []>} : vector<2x32xbf16>, vector<32x4xbf16>, vector<2x4xf32> -> vector<2x4xf32>
    %c0_162 = arith.constant 0 : index
    %c0_163 = arith.constant 0 : index
    %178 = vector.load %arg6[%c0_162, %c0_163] : memref<1x4xf32, #tpu.memory_space<vmem>>, vector<1x4xf32>
    %179 = vector.broadcast %178 : vector<1x4xf32> to vector<2x4xf32>
    %180 = arith.addf %177, %179 : vector<2x4xf32>
    %cst_164 = arith.constant dense<0xFF800000> : vector<2xf32>
    %181 = vector.multi_reduction <maximumf>, %180, %cst_164 [1] : vector<2x4xf32> to vector<2xf32>
    %182 = vector.shape_cast %181 : vector<2xf32> to vector<2x1xf32>
    %183 = vector.broadcast %182 : vector<2x1xf32> to vector<2x4xf32>
    %184 = arith.subf %180, %183 : vector<2x4xf32>
    %185 = math.exp %184 : vector<2x4xf32>
    %cst_165 = arith.constant dense<0.000000e+00> : vector<2xf32>
    %186 = vector.multi_reduction <add>, %185, %cst_165 [1] : vector<2x4xf32> to vector<2xf32>
    %187 = vector.shape_cast %186 : vector<2xf32> to vector<2x1xf32>
    %188 = math.log %187 : vector<2x1xf32>
    %189 = arith.addf %188, %182 : vector<2x1xf32>
    %190 = vector.broadcast %189 : vector<2x1xf32> to vector<2x4xf32>
    %191 = arith.subf %180, %190 : vector<2x4xf32>
    %c0_166 = arith.constant 0 : index
    %c0_167 = arith.constant 0 : index
    %192 = vector.load %arg7[%c0_166, %c0_167] : memref<2x4xf32, #tpu.memory_space<vmem>>, vector<2x4xf32>
    tpu.vector_store %arg7[%c0_166, %c0_167], %191 {strides = array<i32>} : memref<2x4xf32, #tpu.memory_space<vmem>>, vector<2x4xf32>,
    return
  }
}

</mosaic_0001>

<bundles_post_ra>
// kernel: dgcnn_forward.2
= control target key start
LH: loop header
LB: loop body
LE: loop exit
PB: predicated region body
PF: predicated region fallthrough
CT: control target
= control target key end

     0   :  { %vm60_vm0 = vcmask 261120   ;;  %vm133_vm1 = vcmask 1043456   ;;  %vm126_vm2 = vcmask 64512   ;;  %s997_s1 = inlined_call_operand.vmem [shape: bf16[32,8], index: 1, kind: input, shape index: {}]   ;;  %s998_s0 = inlined_call_operand.vmem [shape: bf16[32,32], index: 0, kind: input, shape index: {}]   ;;  %s999_s2 = inlined_call_operand.vmem [shape: bf16[8,32], index: 2, kind: input, shape index: {}]   ;;  %s1000_s4 = inlined_call_operand.vmem [shape: bf16[8,32], index: 4, kind: input, shape index: {}]   ;;  %s1001_s5 = inlined_call_operand.vmem [shape: bf16[2,32,32], index: 5, kind: input, shape index: {}]   ;;  %s1002_s3 = inlined_call_operand.vmem [shape: f32[1,32], index: 3, kind: input, shape index: {}]   ;;  %s1003_s7 = inlined_call_operand.vmem [shape: bf16[2,32,32], index: 7, kind: input, shape index: {}]   ;;  %s1004_s6 = inlined_call_operand.vmem [shape: f32[2,1,32], index: 6, kind: input, shape index: {}]   ;;  %s1005_s8 = inlined_call_operand.vmem [shape: f32[32,32], index: 8, kind: output, shape index: {}]  }
   0x1   :  { %v854_v0 = vld [vmem:[%s997_s1] sm:$0xff]   ;;  %v855_v1 = vld [vmem:[%s997_s1 + $0x8] sm:$0xff]   ;;  %v862_v54 = vld [vmem:[%s1001_s5 + $0x10] sm:$0xff]  }
   0x2   :  { %760 = vmatprep.subr.bf16.mxu0 %v854_v0  ;;  %v856_v2 = vld [vmem:[%s998_s0] sm:$0xff]   ;;  %v924_v3 = vld [vmem:[%s998_s0 + $0x8] sm:$0xff]   ;;  %v863_v55 = vld [vmem:[%s1001_s5 + $0x18] sm:$0xff]  }
   0x3   :  { %761 = vmatpush3.bf16.msra.mxu0 %v854_v0  ;;  %764 = vmatprep.mubr.msk.bf16.mxu0 %vm60_vm0, %v856_v2  ;;  %v118_v4 = vld [vmem:[%s999_s2] sm:$0xf]  ;;  %v859_v30 = vld [vmem:[%s1001_s5 + $0x8] sm:$0xff]   ;;  %v864_v56 = vld [vmem:[%s1003_s7 + $0x10] sm:$0xff]  }
   0x4   :  { %762 = vmatprep.subr.bf16.mxu0 %v855_v1  ;;  %852 = vmatprep.subr.msk.bf16.mxu1 %vm133_vm1, %v118_v4  ;;  %v135_v5 = vsel %vm133_vm1, %v118_v4, 0  ;;  %v186_v6 = vld [vmem:[%s1000_s4] sm:$0xf]  ;;  %v861_v38 = vld [vmem:[%s1003_s7 + $0x8] sm:$0xff]   ;;  %v865_v63 = vld [vmem:[%s1003_s7 + $0x18] sm:$0xff]  }
   0x5   :  { %769 = vmatpush3.bf16.msra.mxu1 %v135_v5  ;;  %v194_v7 = vsel %vm133_vm1, %v186_v6, 0  ;;  %v690_v14 = vld [vmem:[%s1002_s3] ss:$0 sm:$0xff] }
   0x6   :  { %853 = vmatprep.subr.msk.bf16.mxu1 %vm133_vm1, %v186_v6  ;;  %v858_v29 = vld [vmem:[%s1001_s5] sm:$0xff]  }
   0x7   :  { %763 = vmatpush3.bf16.msra.mxu0 %v855_v1  ;;  %v860_v31 = vld [vmem:[%s1003_s7] sm:$0xff]  }
   0x8   :  { %v697_v39 = vld [vmem:[%s1004_s6] ss:$0 sm:$0xff] }
   0xa   :  { %765 = vmatmul.mubr.msk.bf16.vlgmr.msra.gmra.mrb[0].mxu0 %vm60_vm0, %v924_v3 }
   0xb   :  { %808 = vmatprep.mubr.msk.bf16.mxu0 %vm60_vm0, %v856_v2 }
  0xdd   :  { %v766_v8 = vpop.f32.mrb[0].mxu0 }
  0xde   :  { %v101_v9 = vpop.f32.mrb[1].mxu0 }
  0xdf   :  { %v767_v10 = vpop.f32.mrb[2].mxu0 }
  0xe0   :  { %v117_v11 = vpack.c.bf16 %v767_v10, %v766_v8  ;;  %v104_v12 = vpop.f32.mrb[3].mxu0 }
  0xe1   :  { %v116_v13 = vpack.c.bf16 %v104_v12, %v101_v9 }
  0xe3   :  { %770 = vmatprep.mubr.msk.bf16.mxu1 %vm126_vm2, %v116_v13 }
  0xe4   :  { %771 = vmatmul.mubr.msk.bf16.vlgmr.msra.gmra.mrb[0].mxu1 %vm126_vm2, %v117_v11 }
  0xe5   :  { %775 = vmatpush3.bf16.msra.mxu1 %v194_v7  ;;  %776 = vmatprep.mubr.msk.bf16.mxu1 %vm126_vm2, %v854_v0  ;;  %v713_v0 = vld [vmem:[%s1004_s6 + $0x1] ss:$0 sm:$0xff] }
  0xf0   :  { %777 = vmatmul.mubr.msk.bf16.vlgmr.msra.gmra.mrb[0].mxu1 %vm126_vm2, %v855_v1 }
  0xf1   :  { %784 = vmatprep.mubr.msk.bf16.mxu1 %vm60_vm0, %v856_v2 }
 0x1c3   :  { %v778_v15 = vpop.f32.mrb[0].mxu1 }
 0x1c4   :  { %v828_v16 = vadd.f32 %v778_v15, %v690_v14  ;;  %v230_v17 = vpop.f32.mrb[1].mxu1 }
 0x1c5   :  { %v829_v18 = vadd.f32 %v690_v14, %v230_v17  ;;  %v779_v19 = vpop.f32.mrb[2].mxu1 }
 0x1c6   :  { %v830_v20 = vadd.f32 %v779_v19, %v690_v14  ;;  %v233_v21 = vpop.f32.mrb[3].mxu1  ;;  %v251_v23 = vmax.f32 %v828_v16, 0.0 }
 0x1c7   :  { %v831_v22 = vadd.f32 %v690_v14, %v233_v21  ;;  %v249_v25 = vmax.f32 %v829_v18, 0.0 }
 0x1c8   :  { %v252_v24 = vmax.f32 %v830_v20, 0.0 }
 0x1c9   :  { %v250_v26 = vmax.f32 %v831_v22, 0.0 }
 0x1ca   :  { %v254_v27 = vpack.c.bf16 %v252_v24, %v251_v23 }
 0x1cb   :  { %v253_v28 = vpack.c.bf16 %v250_v26, %v249_v25 }
 0x1cd   :  { %780 = vmatprep.subr.bf16.mxu1 %v253_v28 }
 0x1ce   :  { %781 = vmatpush3.bf16.msra.mxu1 %v253_v28 }
 0x1cf   :  { %782 = vmatprep.subr.bf16.mxu1 %v254_v27 }
 0x1d2   :  { %783 = vmatpush3.bf16.msra.mxu1 %v254_v27 }
 0x1d3   :  { %788 = vmatprep.subr.bf16.mxu1 %v858_v29 }
 0x1d5   :  { %785 = vmatmul.mubr.msk.bf16.vlgmr.msra.gmra.mrb[4].mxu1 %vm60_vm0, %v924_v3 }
 0x1d6   :  { %789 = vmatpush3.bf16.msra.mxu1 %v858_v29 }
 0x1d7   :  { %790 = vmatprep.subr.bf16.mxu1 %v859_v30 }
 0x1da   :  { %791 = vmatpush3.bf16.msra.mxu1 %v859_v30 }
 0x1db   :  { %796 = vmatprep.subr.bf16.mxu1 %v860_v31 }
 0x2a8   :  { %v786_v32 = vpop.f32.mrb[4].mxu1 }
 0x2a9   :  { %v289_v33 = vpop.f32.mrb[5].mxu1 }
 0x2aa   :  { %v787_v34 = vpop.f32.mrb[6].mxu1 }
 0x2ab   :  { %v305_v35 = vpack.c.bf16 %v787_v34, %v786_v32  ;;  %v292_v36 = vpop.f32.mrb[7].mxu1 }
 0x2ac   :  { %v304_v37 = vpack.c.bf16 %v292_v36, %v289_v33 }
 0x2ae   :  { %792 = vmatprep.mubr.msk.bf16.mxu1 %vm60_vm0, %v304_v37 }
 0x2af   :  { %793 = vmatmul.mubr.msk.bf16.vlgmr.msra.gmra.mrb[8].mxu1 %vm60_vm0, %v305_v35 }
 0x2b0   :  { %797 = vmatpush3.bf16.msra.mxu1 %v860_v31  ;;  %800 = vmatprep.mubr.msk.bf16.mxu1 %vm60_vm0, %v253_v28 }
 0x2b1   :  { %798 = vmatprep.subr.bf16.mxu1 %v861_v38 }
 0x2b4   :  { %799 = vmatpush3.bf16.msra.mxu1 %v861_v38 }
 0x2bb   :  { %801 = vmatmul.mubr.msk.bf16.vlgmr.msra.gmra.mrb[8].mxu1 %vm60_vm0, %v254_v27 }
 0x38e   :  { %v802_v40 = vpop.f32.mrb[8].mxu1 }
 0x38f   :  { %v832_v41 = vadd.f32 %v802_v40, %v697_v39  ;;  %v440_v42 = vpop.f32.mrb[9].mxu1 }
 0x390   :  { %v833_v43 = vadd.f32 %v697_v39, %v440_v42  ;;  %v803_v44 = vpop.f32.mrb[10].mxu1 }
 0x391   :  { %v834_v45 = vadd.f32 %v803_v44, %v697_v39  ;;  %v443_v46 = vpop.f32.mrb[11].mxu1  ;;  %v461_v48 = vmax.f32 %v832_v41, 0.0 }
 0x392   :  { %v835_v47 = vadd.f32 %v697_v39, %v443_v46  ;;  %v459_v50 = vmax.f32 %v833_v43, 0.0 }
 0x393   :  { %v462_v49 = vmax.f32 %v834_v45, 0.0 }
 0x394   :  { %v460_v51 = vmax.f32 %v835_v47, 0.0 }
 0x395   :  { %v464_v52 = vpack.c.bf16 %v462_v49, %v461_v48 }
 0x396   :  { %v463_v53 = vpack.c.bf16 %v460_v51, %v459_v50 }
 0x398   :  { %804 = vmatprep.subr.bf16.mxu0 %v463_v53 }
 0x399   :  { %805 = vmatpush3.bf16.msra.mxu0 %v463_v53 }
 0x39a   :  { %806 = vmatprep.subr.bf16.mxu0 %v464_v52 }
 0x39d   :  { %807 = vmatpush3.bf16.msra.mxu0 %v464_v52 }
 0x39e   :  { %812 = vmatprep.subr.bf16.mxu0 %v862_v54 }
 0x3a0   :  { %809 = vmatmul.mubr.msk.bf16.vlgmr.msra.gmra.mrb[4].mxu0 %vm60_vm0, %v924_v3 }
 0x3a1   :  { %813 = vmatpush3.bf16.msra.mxu0 %v862_v54 }
 0x3a2   :  { %814 = vmatprep.subr.bf16.mxu0 %v863_v55 }
 0x3a5   :  { %815 = vmatpush3.bf16.msra.mxu0 %v863_v55 }
 0x3a6   :  { %820 = vmatprep.subr.bf16.mxu0 %v864_v56 }
 0x473   :  { %v810_v57 = vpop.f32.mrb[4].mxu0 }
 0x474   :  { %v499_v58 = vpop.f32.mrb[5].mxu0 }
 0x475   :  { %v811_v59 = vpop.f32.mrb[6].mxu0 }
 0x476   :  { %v515_v60 = vpack.c.bf16 %v811_v59, %v810_v57  ;;  %v502_v61 = vpop.f32.mrb[7].mxu0 }
 0x477   :  { %v514_v62 = vpack.c.bf16 %v502_v61, %v499_v58 }
 0x479   :  { %816 = vmatprep.mubr.msk.bf16.mxu0 %vm60_vm0, %v514_v62 }
 0x47a   :  { %817 = vmatmul.mubr.msk.bf16.vlgmr.msra.gmra.mrb[8].mxu0 %vm60_vm0, %v515_v60 }
 0x47b   :  { %821 = vmatpush3.bf16.msra.mxu0 %v864_v56  ;;  %824 = vmatprep.mubr.msk.bf16.mxu0 %vm60_vm0, %v463_v53 }
 0x47c   :  { %822 = vmatprep.subr.bf16.mxu0 %v865_v63 }
 0x47f   :  { %823 = vmatpush3.bf16.msra.mxu0 %v865_v63 }
 0x486   :  { %825 = vmatmul.mubr.msk.bf16.vlgmr.msra.gmra.mrb[8].mxu0 %vm60_vm0, %v464_v52 }
 0x559   :  { %v826_v1 = vpop.f32.mrb[8].mxu0 }
 0x55a   :  { %v836_v2 = vadd.f32 %v826_v1, %v713_v0  ;;  %v653_v3 = vpop.f32.mrb[9].mxu0 }
 0x55b   :  { %v837_v4 = vadd.f32 %v713_v0, %v653_v3  ;;  %v827_v5 = vpop.f32.mrb[10].mxu0 }
 0x55c   :  { %v674_v6 = vmax.f32 %v836_v2, 0.0  ;;  %v838_v7 = vadd.f32 %v827_v5, %v713_v0  ;;  %v656_v8 = vpop.f32.mrb[11].mxu0 }
 0x55d   :  { %v672_v9 = vmax.f32 %v837_v4, 0.0  ;;  %v839_v10 = vadd.f32 %v713_v0, %v656_v8 }
 0x55e   :  { %678 = vst.msk [vmem:[%s1005_s8 + $0x10] sm:$0xff] %vm60_vm0, %v674_v6  ;;  %v675_v11 = vmax.f32 %v838_v7, 0.0 }
 0x55f   :  { %676 = vst.msk [vmem:[%s1005_s8] sm:$0xff] %vm60_vm0, %v672_v9  ;;  %v673_v12 = vmax.f32 %v839_v10, 0.0 }
 0x560   :  { %679 = vst.msk [vmem:[%s1005_s8 + $0x18] sm:$0xff] %vm60_vm0, %v675_v11 }
 0x561   :  { %677 = vst.msk [vmem:[%s1005_s8 + $0x8] sm:$0xff] %vm60_vm0, %v673_v12 }

// kernel: dgcnn_forward.3
= control target key start
LH: loop header
LB: loop body
LE: loop exit
PB: predicated region body
PF: predicated region fallthrough
CT: control target
= control target key end

     0   :  { %v1746_v1 = vmov 0.0   ;;  %vm1747_vm0 = vmmov 0   ;;  %vm53_vm1 = vcmask 261120   ;;  %s2098_s0 = inlined_call_operand.vmem [shape: bf16[8,2,32], index: 0, kind: input, shape index: {}]   ;;  %s2099_s1 = inlined_call_operand.vmem [shape: bf16[3,32,32], index: 1, kind: input, shape index: {}]   ;;  %s2100_s2 = inlined_call_operand.vmem [shape: f32[1,32], index: 2, kind: input, shape index: {}]   ;;  %s2101_s3 = inlined_call_operand.vmem [shape: bf16[6,32,32], index: 3, kind: input, shape index: {}]   ;;  %s2102_s4 = inlined_call_operand.vmem [shape: f32[1,32], index: 4, kind: input, shape index: {}]   ;;  %s2103_s5 = inlined_call_operand.vmem [shape: bf16[32,4], index: 5, kind: input, shape index: {}]   ;;  %s2104_s6 = inlined_call_operand.vmem [shape: f32[1,4], index: 6, kind: input, shape index: {}]   ;;  %s2105_s7 = inlined_call_operand.hbm [shape: f32[2,4], index: 7, kind: output, shape index: {}]  }
   0x1   :  { %v1792_v0 = vld [vmem:[%s2099_s1 + $0x10] sm:$0xff]   ;;  %1495 = vmatprep.subr.bf16.mxu0 %v1746_v1  ;;  %1503 = vmatprep.subr.bf16.mxu1 %v1746_v1  ;;  %v1799_v2 = vld [vmem:[%s2099_s1] sm:$0xff]   ;;  %v1805_v3 = vld [vmem:[%s2099_s1 + $0x18] sm:$0xff]  }
   0x2   :  { %1496 = vmatpush3.bf16.msra.mxu0 %v1792_v0  ;;  %1499 = vmatprep.mubr.msk.bf16.mxu0 %vm1747_vm0, %v1746_v1  ;;  %v1814_v4 = vld [vmem:[%s2099_s1 + $0x8] sm:$0xff]   ;;  %v1337_v5 = vld [vmem:[%s2098_s0 + $0x1] sm:$0x1]  ;;  %v29_v7 = vld [vmem:[%s2098_s0] sm:$0x1] }
   0x3   :  { %1504 = vmatpush3.bf16.msra.mxu1 %v1799_v2  ;;  %1497 = vmatprep.subr.bf16.mxu0 %v1746_v1  ;;  %v1826_v6 = vld [vmem:[%s2099_s1 + $0x20] sm:$0xff]   ;;  %v1837_v8 = vld [vmem:[%s2099_s1 + $0x28] sm:$0xff]  }
   0x4   :  { %1505 = vmatprep.subr.bf16.mxu1 %v1746_v1  ;;  %1507 = vmatprep.mubr.msk.bf16.mxu1 %vm1747_vm0, %v1746_v1  ;;  %v1850_v9 = vld [vmem:[%s2098_s0 + $0x2] sm:$0x1] }
   0x6   :  { %1498 = vmatpush3.bf16.msra.mxu0 %v1805_v3 }
   0x7   :  { %1506 = vmatpush3.bf16.msra.mxu1 %v1814_v4  ;;  %1511 = vmatprep.subr.bf16.mxu0 %v1746_v1 }
   0x8   :  { %1519 = vmatprep.subr.bf16.mxu1 %v1746_v1 }
   0x9   :  { %1500 = vmatmul.mubr.msk.bf16.vlgmr.msra.gmra.mrb[0].mxu0 %vm53_vm1, %v1337_v5 }
   0xa   :  { %1508 = vmatmul.mubr.msk.bf16.vlgmr.msra.gmra.mrb[0].mxu1 %vm53_vm1, %v29_v7  ;;  %1512 = vmatpush3.bf16.msra.mxu0 %v1826_v6 }
   0xb   :  { %1520 = vmatpush3.bf16.msra.mxu1 %v1792_v0  ;;  %1513 = vmatprep.subr.bf16.mxu0 %v1746_v1 }
   0xc   :  { %1521 = vmatprep.subr.bf16.mxu1 %v1746_v1  ;;  %1515 = vmatprep.mubr.msk.bf16.mxu0 %vm1747_vm0, %v1746_v1 }
   0xd   :  { %1523 = vmatprep.mubr.msk.bf16.mxu1 %vm1747_vm0, %v1746_v1 }
   0xe   :  { %1514 = vmatpush3.bf16.msra.mxu0 %v1837_v8 }
   0xf   :  { %1522 = vmatpush3.bf16.msra.mxu1 %v1805_v3  ;;  %1527 = vmatprep.subr.bf16.mxu0 %v1746_v1 }
  0x10   :  { %1535 = vmatprep.subr.bf16.mxu1 %v1746_v1 }
  0x11   :  { %12 = vsyncpa [#allocation3], 0  ;;  %1516 = vmatmul.mubr.msk.bf16.vlgmr.msra.gmra.mrb[4].mxu0 %vm53_vm1, %v1850_v9  ;;  %v1875_v10 = vld [vmem:[%s2098_s0 + $0x3] sm:$0x1]  ;;  %v1705_v12 = vld [vmem:[%s2101_s3 + $0x8] sm:$0xff]   ;;  %vm1308_vm2 = vcmask 25600  }
  0x12   :  { %1524 = vmatmul.mubr.msk.bf16.vlgmr.msra.gmra.mrb[4].mxu1 %vm53_vm1, %v1850_v9  ;;  %1528 = vmatpush3.bf16.msra.mxu0 %v1799_v2  ;;  %v1704_v11 = vld [vmem:[%s2101_s3] sm:$0xff]   ;;  %v1706_v13 = vld [vmem:[%s2101_s3 + $0x10] sm:$0xff]   ;;  %v1707_v14 = vld [vmem:[%s2101_s3 + $0x18] sm:$0xff]  }
  0x13   :  { %1536 = vmatpush3.bf16.msra.mxu1 %v1826_v6  ;;  %1529 = vmatprep.subr.bf16.mxu0 %v1746_v1  ;;  %v1905_v24 = vld [vmem:[%s2100_s2] ss:$0 sm:$0xff]  ;;  %v1937_v50 = vld [vmem:[%s2098_s0 + $0x4] sm:$0x1]  ;;  %v1709_v52 = vld [vmem:[%s2101_s3 + $0x28] sm:$0xff]  }
  0x14   :  { %1537 = vmatprep.subr.bf16.mxu1 %v1746_v1  ;;  %1531 = vmatprep.mubr.msk.bf16.mxu0 %vm1747_vm0, %v1746_v1  ;;  %v1708_v51 = vld [vmem:[%s2101_s3 + $0x20] sm:$0xff]  }
  0x15   :  { %1539 = vmatprep.mubr.msk.bf16.mxu1 %vm1747_vm0, %v1746_v1  ;;  %v1967_v53 = vld [vmem:[%s2098_s0 + $0x5] sm:$0x1] }
  0x16   :  { %1530 = vmatpush3.bf16.msra.mxu0 %v1814_v4 }
  0x17   :  { %1538 = vmatpush3.bf16.msra.mxu1 %v1837_v8  ;;  %1543 = vmatprep.subr.bf16.mxu0 %v1746_v1 }
  0x18   :  { %1551 = vmatprep.subr.bf16.mxu1 %v1746_v1 }
  0x19   :  { %1532 = vmatmul.mubr.msk.bf16.vlgmr.msra.gmra.mrb[8].mxu0 %vm53_vm1, %v1337_v5 }
  0x1a   :  { %1540 = vmatmul.mubr.msk.bf16.vlgmr.msra.gmra.mrb[8].mxu1 %vm53_vm1, %v1875_v10  ;;  %1547 = vmatprep.mubr.msk.bf16.mxu0 %vm1747_vm0, %v1746_v1 }
  0x1b   :  { %1555 = vmatprep.mubr.msk.bf16.mxu1 %vm1747_vm0, %v1746_v1  ;;  %1552 = vmatpush3.bf16.msra.mxu1 %v1704_v11 }
  0x1c   :  { %1553 = vmatprep.subr.bf16.mxu1 %v1746_v1  ;;  %1544 = vmatpush3.bf16.msra.mxu0 %v1706_v13 }
  0x1d   :  { %1545 = vmatprep.subr.bf16.mxu0 %v1746_v1 }
  0x1f   :  { %1554 = vmatpush3.bf16.msra.mxu1 %v1705_v12 }
  0x20   :  { %1567 = vmatprep.subr.bf16.mxu1 %v1746_v1  ;;  %1546 = vmatpush3.bf16.msra.mxu0 %v1707_v14 }
  0x21   :  { %1559 = vmatprep.subr.bf16.mxu0 %v1746_v1 }
  0xdc   :  { %v91_v15 = vpop.f32.mrb[0].mxu0 }
  0xdd   :  { %v146_v16 = vpop.f32.mrb[0].mxu1  ;;  %v1501_v17 = vpop.f32.mrb[1].mxu0 }
  0xde   :  { %v147_v18 = vadd.f32 %v146_v16, %v91_v15  ;;  %v1509_v19 = vpop.f32.mrb[1].mxu1  ;;  %v94_v20 = vpop.f32.mrb[2].mxu0 }
  0xdf   :  { %v149_v21 = vpop.f32.mrb[2].mxu1  ;;  %v1502_v22 = vpop.f32.mrb[3].mxu0 }
  0xe0   :  { %v1510_v23 = vpop.f32.mrb[3].mxu1 }
  0xe4   :  { %v208_v25 = vpop.f32.mrb[4].mxu0 }
  0xe5   :  { %v214_v26 = vadd.f32 %v208_v25, %v147_v18  ;;  %v262_v27 = vpop.f32.mrb[4].mxu1  ;;  %v1517_v28 = vpop.f32.mrb[5].mxu0 }
  0xe6   :  { %v1525_v29 = vpop.f32.mrb[5].mxu1  ;;  %v211_v30 = vpop.f32.mrb[6].mxu0 }
  0xe7   :  { %v221_v31 = vadd.f32 %v1905_v24, %v214_v26  ;;  %v265_v32 = vpop.f32.mrb[6].mxu1  ;;  %v1518_v33 = vpop.f32.mrb[7].mxu0 }
  0xe8   :  { %v1526_v34 = vpop.f32.mrb[7].mxu1  ;;  %v1710_v33 = vld [vmem:[%s2101_s3 + $0x30] sm:$0xff]  }
  0xe9   :  { %v222_v35 = vmax.f32 %v221_v31, 0.0  ;;  %v1395_v34 = vld [vmem:[%s2098_s0 + $0x6] sm:$0x1] }
  0xeb   :  { %v223_v36 = vpack.c.bf16 %v222_v35, %v222_v35 }
  0xec   :  { %v302_v37 = vpop.f32.mrb[8].mxu0 }
  0xed   :  { %v303_v38 = vadd.f32 %v302_v37, %v262_v27  ;;  %v347_v39 = vpop.f32.mrb[8].mxu1  ;;  %v1533_v40 = vpop.f32.mrb[9].mxu0  ;;  %1556 = vmatmul.mubr.msk.bf16.vlgmr.msra.gmra.mrb[12].mxu1 %vm53_vm1, %v223_v36 }
  0xee   :  { %v1541_v41 = vpop.f32.mrb[9].mxu1  ;;  %v305_v42 = vpop.f32.mrb[10].mxu0  ;;  %1568 = vmatpush3.bf16.msra.mxu1 %v1799_v2  ;;  %1571 = vmatprep.mubr.msk.bf16.mxu1 %vm1747_vm0, %v1746_v1 }
  0xef   :  { %v353_v43 = vadd.f32 %v347_v39, %v303_v38  ;;  %v350_v44 = vpop.f32.mrb[10].mxu1  ;;  %v1534_v45 = vpop.f32.mrb[11].mxu0  ;;  %1569 = vmatprep.subr.bf16.mxu1 %v1746_v1 }
  0xf0   :  { %v1542_v46 = vpop.f32.mrb[11].mxu1 }
  0xf1   :  { %v354_v47 = vadd.f32 %v1905_v24, %v353_v43 }
  0xf2   :  { %1570 = vmatpush3.bf16.msra.mxu1 %v1814_v4 }
  0xf3   :  { %v355_v48 = vmax.f32 %v354_v47, 0.0  ;;  %1583 = vmatprep.subr.bf16.mxu1 %v1746_v1 }
  0xf5   :  { %v356_v49 = vpack.c.bf16 %v355_v48, %v355_v48  ;;  %1572 = vmatmul.mubr.msk.bf16.vlgmr.msra.gmra.mrb[16].mxu1 %vm53_vm1, %v1850_v9 }
  0xf6   :  { %1587 = vmatprep.mubr.msk.bf16.mxu1 %vm1747_vm0, %v1746_v1  ;;  %1584 = vmatpush3.bf16.msra.mxu1 %v1708_v51 }
  0xf7   :  { %1548 = vmatmul.mubr.msk.bf16.vlgmr.msra.gmra.mrb[12].mxu0 %vm53_vm1, %v356_v49  ;;  %1585 = vmatprep.subr.bf16.mxu1 %v1746_v1 }
  0xf8   :  { %1560 = vmatpush3.bf16.msra.mxu0 %v1792_v0  ;;  %1563 = vmatprep.mubr.msk.bf16.mxu0 %vm1747_vm0, %v1746_v1 }
  0xf9   :  { %1561 = vmatprep.subr.bf16.mxu0 %v1746_v1 }
  0xfa   :  { %1586 = vmatpush3.bf16.msra.mxu1 %v1709_v52 }
  0xfb   :  { %1599 = vmatprep.subr.bf16.mxu1 %v1746_v1 }
  0xfc   :  { %1562 = vmatpush3.bf16.msra.mxu0 %v1805_v3 }
  0xfd   :  { %1575 = vmatprep.subr.bf16.mxu0 %v1746_v1 }
  0xff   :  { %1564 = vmatmul.mubr.msk.bf16.vlgmr.msra.gmra.mrb[16].mxu0 %vm53_vm1, %v1875_v10 }
 0x100   :  { %1576 = vmatpush3.bf16.msra.mxu0 %v1826_v6  ;;  %1579 = vmatprep.mubr.msk.bf16.mxu0 %vm1747_vm0, %v1746_v1 }
 0x101   :  { %1577 = vmatprep.subr.bf16.mxu0 %v1746_v1 }
 0x104   :  { %1578 = vmatpush3.bf16.msra.mxu0 %v1837_v8 }
 0x105   :  { %1591 = vmatprep.subr.bf16.mxu0 %v1746_v1 }
 0x107   :  { %1580 = vmatmul.mubr.msk.bf16.vlgmr.msra.gmra.mrb[20].mxu0 %vm53_vm1, %v1937_v50 }
 0x108   :  { %1592 = vmatpush3.bf16.msra.mxu0 %v1792_v0  ;;  %1595 = vmatprep.mubr.msk.bf16.mxu0 %vm1747_vm0, %v1746_v1 }
 0x109   :  { %1593 = vmatprep.subr.bf16.mxu0 %v1746_v1 }
 0x10c   :  { %1594 = vmatpush3.bf16.msra.mxu0 %v1805_v3 }
 0x10d   :  { %1607 = vmatprep.subr.bf16.mxu0 %v1746_v1 }
 0x10f   :  { %1596 = vmatmul.mubr.msk.bf16.vlgmr.msra.gmra.mrb[24].mxu0 %vm53_vm1, %v1937_v50 }
 0x110   :  { %1608 = vmatpush3.bf16.msra.mxu0 %v1826_v6  ;;  %1611 = vmatprep.mubr.msk.bf16.mxu0 %vm1747_vm0, %v1746_v1 }
 0x111   :  { %1609 = vmatprep.subr.bf16.mxu0 %v1746_v1 }
 0x114   :  { %1610 = vmatpush3.bf16.msra.mxu0 %v1837_v8 }
 0x115   :  { %1623 = vmatprep.subr.bf16.mxu0 %v1746_v1 }
 0x117   :  { %1612 = vmatmul.mubr.msk.bf16.vlgmr.msra.gmra.mrb[28].mxu0 %vm53_vm1, %v1967_v53 }
 0x118   :  { %1624 = vmatpush3.bf16.msra.mxu0 %v1792_v0  ;;  %1627 = vmatprep.mubr.msk.bf16.mxu0 %vm1747_vm0, %v1746_v1 }
 0x119   :  { %1625 = vmatprep.subr.bf16.mxu0 %v1746_v1 }
 0x11c   :  { %1626 = vmatpush3.bf16.msra.mxu0 %v1805_v3 }
 0x11d   :  { %1639 = vmatprep.subr.bf16.mxu0 %v1746_v1 }
 0x11f   :  { %1628 = vmatmul.mubr.msk.bf16.vlgmr.msra.gmra.mrb[32].mxu0 %vm53_vm1, %v1967_v53 }
 0x120   :  { %1640 = vmatpush3.bf16.msra.mxu0 %v1826_v6  ;;  %1643 = vmatprep.mubr.msk.bf16.mxu0 %vm1747_vm0, %v1746_v1 }
 0x121   :  { %1641 = vmatprep.subr.bf16.mxu0 %v1746_v1 }
 0x124   :  { %1642 = vmatpush3.bf16.msra.mxu0 %v1837_v8 }
 0x125   :  { %1655 = vmatprep.subr.bf16.mxu0 %v1746_v1 }
 0x127   :  { %1644 = vmatmul.mubr.msk.bf16.vlgmr.msra.gmra.mrb[36].mxu0 %vm53_vm1, %v1395_v34 }
 0x128   :  { %1656 = vmatpush3.bf16.msra.mxu0 %v1792_v0  ;;  %1659 = vmatprep.mubr.msk.bf16.mxu0 %vm1747_vm0, %v1746_v1 }
 0x129   :  { %1657 = vmatprep.subr.bf16.mxu0 %v1746_v1 }
 0x12c   :  { %1658 = vmatpush3.bf16.msra.mxu0 %v1805_v3 }
 0x12d   :  { %1671 = vmatprep.subr.bf16.mxu0 %v1746_v1 }
 0x12f   :  { %1660 = vmatmul.mubr.msk.bf16.vlgmr.msra.gmra.mrb[40].mxu0 %vm53_vm1, %v1395_v34 }
 0x130   :  { %1672 = vmatpush3.bf16.msra.mxu0 %v1826_v6  ;;  %1675 = vmatprep.mubr.msk.bf16.mxu0 %vm1747_vm0, %v1746_v1 }
 0x131   :  { %1673 = vmatprep.subr.bf16.mxu0 %v1746_v1 }
 0x134   :  { %1674 = vmatpush3.bf16.msra.mxu0 %v1837_v8 }
 0x135   :  { %1687 = vmatprep.subr.bf16.mxu0 %v1746_v1 }
 0x1c0   :  { %v466_v54 = vpop.f32.mrb[12].mxu1 }
 0x1c1   :  { %v1557_v55 = vpop.f32.mrb[13].mxu1 }
 0x1c2   :  { %v469_v56 = vpop.f32.mrb[14].mxu1  ;;  %v1712_v55 = vld [vmem:[%s2101_s3 + $0x40] sm:$0xff]  }
 0x1c3   :  { %v1558_v57 = vpop.f32.mrb[15].mxu1  ;;  %v1406_v56 = vld [vmem:[%s2098_s0 + $0x7] sm:$0x1] }
 0x1c4   :  { %1676 = vmatmul.mubr.msk.bf16.vlgmr.msra.gmra.mrb[44].mxu0 %vm53_vm1, %v1406_v56 }
 0x1c5   :  { %1691 = vmatprep.mubr.msk.bf16.mxu0 %vm1747_vm0, %v1746_v1 }
 0x1c8   :  { %v546_v58 = vpop.f32.mrb[16].mxu1 }
 0x1c9   :  { %v1573_v59 = vpop.f32.mrb[17].mxu1 }
 0x1ca   :  { %v411_v60 = vpop.f32.mrb[12].mxu0  ;;  %v549_v61 = vpop.f32.mrb[18].mxu1 }
 0x1cb   :  { %v467_v62 = vadd.f32 %v466_v54, %v411_v60  ;;  %v1549_v63 = vpop.f32.mrb[13].mxu0  ;;  %v1574_v5 = vpop.f32.mrb[19].mxu1 }
 0x1cc   :  { %v414_v7 = vpop.f32.mrb[14].mxu0 }
 0x1cd   :  { %v1550_v9 = vpop.f32.mrb[15].mxu0 }
 0x1d2   :  { %v506_v11 = vpop.f32.mrb[16].mxu0 }
 0x1d3   :  { %v1565_v12 = vpop.f32.mrb[17].mxu0  ;;  %v547_v13 = vadd.f32 %v546_v58, %v506_v11 }
 0x1d4   :  { %v509_v14 = vpop.f32.mrb[18].mxu0 }
 0x1d5   :  { %v1566_v15 = vpop.f32.mrb[19].mxu0 }
 0x1da   :  { %v591_v16 = vpop.f32.mrb[20].mxu0 }
 0x1db   :  { %v597_v17 = vadd.f32 %v591_v16, %v547_v13  ;;  %v1581_v18 = vpop.f32.mrb[21].mxu0 }
 0x1dc   :  { %v594_v19 = vpop.f32.mrb[22].mxu0 }
 0x1dd   :  { %v598_v20 = vadd.f32 %v1905_v24, %v597_v17  ;;  %v1582_v21 = vpop.f32.mrb[23].mxu0 }
 0x1df   :  { %v599_v22 = vmax.f32 %v598_v20, 0.0 }
 0x1e1   :  { %v600_v23 = vpack.c.bf16 %v599_v22, %v599_v22 }
 0x1e2   :  { %v696_v25 = vpop.f32.mrb[24].mxu0 }
 0x1e3   :  { %1588 = vmatmul.mubr.msk.bf16.vlgmr.msra.gmra.mrb[20].mxu1 %vm53_vm1, %v600_v23  ;;  %v1597_v26 = vpop.f32.mrb[25].mxu0 }
 0x1e4   :  { %1600 = vmatpush3.bf16.msra.mxu1 %v1799_v2  ;;  %1603 = vmatprep.mubr.msk.bf16.mxu1 %vm1747_vm0, %v1746_v1  ;;  %v699_v27 = vpop.f32.mrb[26].mxu0 }
 0x1e5   :  { %1601 = vmatprep.subr.bf16.mxu1 %v1746_v1  ;;  %v1598_v28 = vpop.f32.mrb[27].mxu0 }
 0x1e8   :  { %1602 = vmatpush3.bf16.msra.mxu1 %v1814_v4 }
 0x1e9   :  { %1615 = vmatprep.subr.bf16.mxu1 %v1746_v1 }
 0x1ea   :  { %v781_v29 = vpop.f32.mrb[28].mxu0 }
 0x1eb   :  { %1604 = vmatmul.mubr.msk.bf16.vlgmr.msra.gmra.mrb[24].mxu1 %vm53_vm1, %v1875_v10  ;;  %v1613_v30 = vpop.f32.mrb[29].mxu0  ;;  %v1711_v10 = vld [vmem:[%s2101_s3 + $0x38] sm:$0xff]  }
 0x1ec   :  { %1619 = vmatprep.mubr.msk.bf16.mxu1 %vm1747_vm0, %v1746_v1  ;;  %v784_v31 = vpop.f32.mrb[30].mxu0  ;;  %1616 = vmatpush3.bf16.msra.mxu1 %v1710_v33 }
 0x1ed   :  { %v1614_v32 = vpop.f32.mrb[31].mxu0  ;;  %1617 = vmatprep.subr.bf16.mxu1 %v1746_v1 }
 0x1f0   :  { %1618 = vmatpush3.bf16.msra.mxu1 %v1711_v10 }
 0x1f1   :  { %1631 = vmatprep.subr.bf16.mxu1 %v1746_v1 }
 0x1f2   :  { %v886_v8 = vpop.f32.mrb[32].mxu0 }
 0x1f3   :  { %v1629_v46 = vpop.f32.mrb[33].mxu0 }
 0x1f4   :  { %v889_v47 = vpop.f32.mrb[34].mxu0 }
 0x1f5   :  { %v1630_v48 = vpop.f32.mrb[35].mxu0 }
 0x1fa   :  { %v971_v49 = vpop.f32.mrb[36].mxu0 }
 0x1fb   :  { %v1645_v51 = vpop.f32.mrb[37].mxu0 }
 0x1fc   :  { %v974_v52 = vpop.f32.mrb[38].mxu0 }
 0x1fd   :  { %v1646_v54 = vpop.f32.mrb[39].mxu0 }
 0x202   :  { %v1076_v15 = vpop.f32.mrb[40].mxu0 }
 0x203   :  { %v1661_v16 = vpop.f32.mrb[41].mxu0 }
 0x204   :  { %v1079_v17 = vpop.f32.mrb[42].mxu0 }
 0x205   :  { %v1662_v18 = vpop.f32.mrb[43].mxu0 }
 0x2b6   :  { %v655_v0 = vpop.f32.mrb[20].mxu1 }
 0x2b7   :  { %v661_v35 = vadd.f32 %v655_v0, %v467_v62  ;;  %v1589_v36 = vpop.f32.mrb[21].mxu1 }
 0x2b8   :  { %v658_v37 = vpop.f32.mrb[22].mxu1  ;;  %v1717_v36 = vld [vmem:[%s2103_s5 + $0x8] sm:$0xff]  }
 0x2b9   :  { %v1590_v3 = vpop.f32.mrb[23].mxu1 }
 0x2be   :  { %v736_v38 = vpop.f32.mrb[24].mxu1 }
 0x2bf   :  { %v737_v39 = vadd.f32 %v736_v38, %v696_v25  ;;  %v1605_v40 = vpop.f32.mrb[25].mxu1 }
 0x2c0   :  { %v739_v41 = vpop.f32.mrb[26].mxu1 }
 0x2c1   :  { %v787_v42 = vadd.f32 %v781_v29, %v737_v39  ;;  %v1606_v6 = vpop.f32.mrb[27].mxu1 }
 0x2c3   :  { %v788_v43 = vadd.f32 %v1905_v24, %v787_v42 }
 0x2c5   :  { %v789_v44 = vmax.f32 %v788_v43, 0.0 }
 0x2c7   :  { %v790_v45 = vpack.c.bf16 %v789_v44, %v789_v44 }
 0x2c9   :  { %1620 = vmatmul.mubr.msk.bf16.vlgmr.msra.gmra.mrb[28].mxu1 %vm53_vm1, %v790_v45 }
 0x2ca   :  { %1632 = vmatpush3.bf16.msra.mxu1 %v1799_v2  ;;  %1635 = vmatprep.mubr.msk.bf16.mxu1 %vm1747_vm0, %v1746_v1 }
 0x2cb   :  { %1633 = vmatprep.subr.bf16.mxu1 %v1746_v1 }
 0x2ce   :  { %1634 = vmatpush3.bf16.msra.mxu1 %v1814_v4 }
 0x2cf   :  { %1647 = vmatprep.subr.bf16.mxu1 %v1746_v1 }
 0x2d1   :  { %1636 = vmatmul.mubr.msk.bf16.vlgmr.msra.gmra.mrb[32].mxu1 %vm53_vm1, %v1937_v50  ;;  %v1713_v50 = vld [vmem:[%s2101_s3 + $0x48] sm:$0xff]  }
 0x2d2   :  { %1651 = vmatprep.mubr.msk.bf16.mxu1 %vm1747_vm0, %v1746_v1  ;;  %1648 = vmatpush3.bf16.msra.mxu1 %v1712_v55 }
 0x2d3   :  { %1649 = vmatprep.subr.bf16.mxu1 %v1746_v1 }
 0x2d6   :  { %1650 = vmatpush3.bf16.msra.mxu1 %v1713_v50 }
 0x2d7   :  { %1663 = vmatprep.subr.bf16.mxu1 %v1746_v1 }
 0x39c   :  { %v845_v57 = vpop.f32.mrb[28].mxu1 }
 0x39d   :  { %v851_v58 = vadd.f32 %v845_v57, %v661_v35  ;;  %v1621_v59 = vpop.f32.mrb[29].mxu1  ;;  %v1716_v35 = vld [vmem:[%s2103_s5] sm:$0xff]  }
 0x39e   :  { %v848_v60 = vpop.f32.mrb[30].mxu1  ;;  %1688 = vmatpush3.bf16.msra.mxu0 %v1716_v35 }
 0x39f   :  { %v1622_v61 = vpop.f32.mrb[31].mxu1  ;;  %1689 = vmatprep.subr.bf16.mxu0 %v1746_v1 }
 0x3a2   :  { %1690 = vmatpush3.bf16.msra.mxu0 %v1717_v36 }
 0x3a4   :  { %v926_v62 = vpop.f32.mrb[32].mxu1 }
 0x3a5   :  { %v927_v63 = vadd.f32 %v926_v62, %v886_v8  ;;  %v1637_v5 = vpop.f32.mrb[33].mxu1 }
 0x3a6   :  { %v929_v7 = vpop.f32.mrb[34].mxu1 }
 0x3a7   :  { %v977_v9 = vadd.f32 %v971_v49, %v927_v63  ;;  %v1638_v11 = vpop.f32.mrb[35].mxu1 }
 0x3a9   :  { %v978_v12 = vadd.f32 %v1905_v24, %v977_v9 }
 0x3ab   :  { %v979_v13 = vmax.f32 %v978_v12, 0.0 }
 0x3ad   :  { %v980_v14 = vpack.c.bf16 %v979_v13, %v979_v13 }
 0x3af   :  { %1652 = vmatmul.mubr.msk.bf16.vlgmr.msra.gmra.mrb[36].mxu1 %vm53_vm1, %v980_v14 }
 0x3b0   :  { %1664 = vmatpush3.bf16.msra.mxu1 %v1799_v2  ;;  %1667 = vmatprep.mubr.msk.bf16.mxu1 %vm1747_vm0, %v1746_v1  ;;  %v1161_v2 = vpop.f32.mrb[44].mxu0 }
 0x3b1   :  { %1665 = vmatprep.subr.bf16.mxu1 %v1746_v1  ;;  %v1677_v19 = vpop.f32.mrb[45].mxu0 }
 0x3b2   :  { %v1164_v20 = vpop.f32.mrb[46].mxu0 }
 0x3b3   :  { %v1678_v21 = vpop.f32.mrb[47].mxu0 }
 0x3b4   :  { %1666 = vmatpush3.bf16.msra.mxu1 %v1814_v4  ;;  %v1714_v4 = vld [vmem:[%s2101_s3 + $0x50] sm:$0xff]  }
 0x3b5   :  { %1679 = vmatprep.subr.bf16.mxu1 %v1746_v1 }
 0x3b7   :  { %1668 = vmatmul.mubr.msk.bf16.vlgmr.msra.gmra.mrb[40].mxu1 %vm53_vm1, %v1967_v53  ;;  %v1715_v53 = vld [vmem:[%s2101_s3 + $0x58] sm:$0xff]  }
 0x3b8   :  { %1683 = vmatprep.mubr.msk.bf16.mxu1 %vm1747_vm0, %v1746_v1  ;;  %1680 = vmatpush3.bf16.msra.mxu1 %v1714_v4 }
 0x3b9   :  { %1681 = vmatprep.subr.bf16.mxu1 %v1746_v1  ;;  %v1416_v1 = vld [vmem:[%s2104_s6] ss:$0 sm:$0xff] }
 0x3bc   :  { %1682 = vmatpush3.bf16.msra.mxu1 %v1715_v53 }
 0x482   :  { %v1035_v22 = vpop.f32.mrb[36].mxu1 }
 0x483   :  { %v1041_v23 = vadd.f32 %v1035_v22, %v851_v58  ;;  %v1653_v25 = vpop.f32.mrb[37].mxu1 }
 0x484   :  { %v1038_v26 = vpop.f32.mrb[38].mxu1 }
 0x485   :  { %v1654_v27 = vpop.f32.mrb[39].mxu1 }
 0x48a   :  { %v1116_v28 = vpop.f32.mrb[40].mxu1 }
 0x48b   :  { %v1117_v29 = vadd.f32 %v1116_v28, %v1076_v15  ;;  %v1669_v30 = vpop.f32.mrb[41].mxu1 }
 0x48c   :  { %v1119_v31 = vpop.f32.mrb[42].mxu1 }
 0x48d   :  { %v1167_v32 = vadd.f32 %v1161_v2, %v1117_v29  ;;  %v1670_v33 = vpop.f32.mrb[43].mxu1 }
 0x48f   :  { %v1168_v10 = vadd.f32 %v1905_v24, %v1167_v32  ;;  %v1415_v24 = vld [vmem:[%s2102_s4] ss:$0 sm:$0xff]  ;;  %s1748_s4 = smov [#allocation2]  }
 0x490   :  { %s1329_s5 = sshll.u32 %s1748_s4, 4  ;;  %s1330_s5 = int_to_ptr.vmem [resolvable:$true] %s1329_s5 }
 0x491   :  { %v1169_v34 = vmax.f32 %v1168_v10, 0.0  ;;  %s1722_s6 = scalar_lea.vmem %s1330_s5, 32  ;;  %p1727_p1 = scmp.lt.s32.totalorder %s1330_s5, %s1330_s5 }
 0x492   :  { %p1723_p0 = scmp.ne.s32.totalorder %s1330_s5, %s1722_s6  ;;  %p1728_p2 = scmp.lt.s32.totalorder %s1722_s6, %s1722_s6 }
 0x493   :  { %v1170_v0 = vpack.c.bf16 %v1169_v34, %v1169_v34 }
 0x494   :  { %p1729_p3 = por %p1728_p2, %p1727_p1 }
 0x495   :  { %1684 = vmatmul.mubr.msk.bf16.vlgmr.msra.gmra.mrb[44].mxu1 %vm53_vm1, %v1170_v0 }
 0x496   :  { %p1730_p4 = pnand %p1729_p3, %p1723_p0 }
 0x568   :  { %v1225_v37 = vpop.f32.mrb[44].mxu1 }
 0x569   :  { %v1231_v3 = vadd.f32 %v1225_v37, %v1041_v23  ;;  %v1685_v38 = vpop.f32.mrb[45].mxu1 }
 0x56a   :  { %v1228_v39 = vpop.f32.mrb[46].mxu1 }
 0x56b   :  { %v1239_v40 = vadd.f32 %v1415_v24, %v1231_v3  ;;  %v1686_v41 = vpop.f32.mrb[47].mxu1 }
 0x56d   :  { %v1240_v42 = vmax.f32 %v1239_v40, 0.0 }
 0x56f   :  { %v1241_v6 = vpack.c.bf16 %v1240_v42, %v1240_v42 }
 0x571   :  { %1692 = vmatmul.mubr.msk.bf16.vlgmr.msra.gmra.mrb[48].mxu0 %vm53_vm1, %v1241_v6 }
 0x644   :  { %v1302_v43 = vpop.f32.mrb[48].mxu0 }
 0x645   :  { %v1303_v44 = vadd.f32 %v1416_v1, %v1302_v43  ;;  %v1693_v45 = vpop.f32.mrb[49].mxu0 }
 0x646   :  { %v1305_v8 = vpop.f32.mrb[50].mxu0 }
 0x647   :  { %v1694_v46 = vpop.f32.mrb[51].mxu0  ;;  %v1309_v47 = vsel %vm1308_vm2, %v1303_v44, -inf }
 0x648   :  { %1310 = vmax.xlane.f32.xlu0 %v1309_v47 }
 0x6d5   :  { %v1311_v48 = vpop.xlane.xlu0 %1310 }
 0x6d6   :  { %v1312_v49 = vsub.f32 %v1303_v44, %v1311_v48 }
 0x6d8   :  { %v1313_v51 = vmul.f32 1.442695, %v1312_v49 }
 0x6da   :  { %1718 = vpow2.f32 %v1313_v51 }
 0x6e4   :  { %v1719_v52 = vpop.eup %1718 }
 0x6e5   :  { %v1315_v54 = vsel %vm1308_vm2, %v1719_v52, 0.0 }
 0x6e6   :  { %1316 = vadd.xlane.f32.xlu0 %v1315_v54 }
 0x773   :  { %v1317_v55 = vpop.xlane.xlu0 %1316 }
 0x774   :  { %1720 = vlog2.f32 %v1317_v55 }
 0x77e   :  { %v1721_v50 = vpop.eup %1720 }
 0x77f   :  { %v1319_v56 = vmul.f32 0.6931472, %v1721_v50 }
 0x781   :  { %v1320_v57 = vadd.f32 %v1319_v56, %v1311_v48 }
 0x783   :  { %v1321_v58 = vsub.f32 %v1303_v44, %v1320_v57 }
 0x785   :  { %1322 = vst.msk [vmem:[#allocation2] sm:$0x3] %vm1308_vm2, %v1321_v58 }
 0x786   :  { %1733 = shalt.err (!%p1730_p4)
}
 0x787   :  { %s1734_s13 = scalar_lea.hbm %s2105_s7, 32 }
 0x788   :  { %p1735_p5 = scmp.ne.s32.totalorder %s2105_s7, %s1734_s13  ;;  %p1738_p6 = scmp.lt.u32.totalorder %s1734_s13, %s2105_s7 }
 0x78a   :  { %p1740_p7 = pnand %p1738_p6, %p1735_p5 }
 0x78c   :  { %1743 = shalt.err (!%p1740_p7)
}
 0x78d   :  { %1332 = dma.vmem_to_hbm [thread:$0]  %s1330_s5, 32, %s2105_s7, [#allocation3]  }
 0x78e   :  { %1744 = dma.done.wait [#allocation3], 32  }
 0x78f   :  { %1745 = vsyncadd [#allocation3], 4294967264 }
 0x790   :  { %1336 = vsyncpa [#allocation3], 1 }

</bundles_post_ra>
